<compile_context>
chip_gen: v6e
topology: v6e:2x2x1
jax: 0.10.0
libtpu: 0.0.40
codegen_flags: <defaults>
</compile_context>

<pallas_src>
import functools
import math

import jax
import jax.numpy as jnp
from jax import lax
from jax.experimental import pallas as pl
from jax.experimental.pallas import tpu as pltpu

# -------------------- model hyper-parameters (small, consistent) ------------
D_MODEL = 32      # conv input channels
D_OUT = 32        # embed dim (d_model_out)
NHEAD = 4
HEAD_DIM = D_OUT // NHEAD
DFF = 64          # dim_feedforward
EPS = 1e-5        # nn.LayerNorm default eps

# layout of the packed per-channel vectors (all stored as (len, 1) columns;
# every offset is a multiple of 32 -> sublane aligned)
_VEC_ORDER = ("bp", "bqkv", "bo", "b11", "b12", "g12", "be12", "g13", "be13")
_VEC_SIZES = dict(bp=D_OUT, bqkv=3 * D_OUT, bo=D_OUT, b11=DFF, b12=D_OUT,
                  g12=D_OUT, be12=D_OUT, g13=D_OUT, be13=D_OUT)
_VEC_OFF = {}
_off = 0
for _name in _VEC_ORDER:
    _VEC_OFF[_name] = _off
    _off += _VEC_SIZES[_name]
_VEC_TOTAL = _off  # 384

# layout of the main weight pack (all blocks have 32 columns; 8-aligned rows)
_WA_ROWS = dict(wp_t=(0, D_OUT),                         # (32, 32)
                wqkv_t=(D_OUT, 4 * D_OUT),               # (96, 32)
                wo=(4 * D_OUT, 5 * D_OUT),               # (32, 32) (in, out)
                w11_t=(5 * D_OUT, 5 * D_OUT + DFF))      # (64, 32)
_WA_TOTAL = 5 * D_OUT + DFF  # 224


def _layernorm_cols(x, g, b):
    """LayerNorm over the channel (sublane) axis. x: (D, L), g/b: (D, 1)."""
    mu = jnp.mean(x, axis=0, keepdims=True)
    var = jnp.mean((x - mu) ** 2, axis=0, keepdims=True)
    return (x - mu) * lax.rsqrt(var + EPS) * g + b


def _gelu_exact(x):
    # torch.nn.GELU() default (approximate='none') -> erf form
    return 0.5 * x * (1.0 + lax.erf(x * (1.0 / math.sqrt(2.0))))


# ------------------------------- kernel -------------------------------------
def cross_transformer_kernel(x1_ref, x2_ref,          # (D_MODEL, block_b*n) each
                             wA_ref, w12_ref,         # packed weights
                             vecs_ref,                # packed bias/gamma/beta
                             out_ref,                 # (D_OUT, block_b*n)
                             o_scratch,               # VMEM (D_OUT, block_b*n) f32
                             *, block_b, n):
    L1 = block_b * n

    wA = wA_ref[...]
    wp_t = wA[_WA_ROWS["wp_t"][0]:_WA_ROWS["wp_t"][1]]
    wqkv_t = wA[_WA_ROWS["wqkv_t"][0]:_WA_ROWS["wqkv_t"][1]]
    wo = wA[_WA_ROWS["wo"][0]:_WA_ROWS["wo"][1]]        # (D_OUT_in, D_OUT_out)
    w11_t = wA[_WA_ROWS["w11_t"][0]:_WA_ROWS["w11_t"][1]]
    w12_t = w12_ref[...]                                 # (D_OUT, DFF)

    vecs = vecs_ref[...]                                  # (_VEC_TOTAL, 1)

    def vec(name):
        o = _VEC_OFF[name]
        return vecs[o:o + _VEC_SIZES[name]]

    bp, bqkv, bo = vec("bp"), vec("bqkv"), vec("bo")
    b11, b12 = vec("b11"), vec("b12")
    g12, be12 = vec("g12"), vec("be12")
    g13, be13 = vec("g13"), vec("be13")

    cdim = (((0,), (0,)), ((), ()))   # contract sublane dim of both operands

    # ---- fused stream-1|stream-2 slab: one proj, one LN, one QKV matmul ----
    x = jnp.concatenate([x1_ref[...], x2_ref[...]], axis=1).astype(jnp.float32)   # (32, 2*L1)
    s = jnp.dot(wp_t, x, preferred_element_type=jnp.float32) + bp                  # input_proj
    sn = _layernorm_cols(s, g13, be13)                                             # norm13
    qkv = jnp.dot(wqkv_t, sn, preferred_element_type=jnp.float32) + bqkv           # (96, 2*L1)

    s1n = sn[:, 0:L1]                         # normed stream-1 (residual base)
    q_all = qkv[0:D_OUT, 0:L1]                # 1/sqrt(hd) already folded into Wq/bq
    k_all = qkv[D_OUT:2 * D_OUT, L1:2 * L1]
    v_all = qkv[2 * D_OUT:3 * D_OUT, L1:2 * L1]

    # ---- multi-head cross attention (deferred softmax normalization) -------
    for tb in range(block_b):                 # static unroll over in-block batch
        cl, ch = tb * n, (tb + 1) * n
        for h in range(NHEAD):                # static unroll over heads
            lo, hi = h * HEAD_DIM, (h + 1) * HEAD_DIM
            qh = q_all[lo:hi, cl:ch]          # (8, n)
            kh = k_all[lo:hi, cl:ch]
            vh = v_all[lo:hi, cl:ch]
            # scores transposed (Nk, Nq) so max/sum are lane-shaped (1, Nq)
            st = lax.dot_general(kh, qh, cdim, preferred_element_type=jnp.float32)
            st = st - jnp.max(st, axis=0, keepdims=True)
            p = jnp.exp(st)                                        # un-normalized
            l = jnp.sum(p, axis=0, keepdims=True)                  # (1, Nq)
            oh = jnp.dot(vh, p, preferred_element_type=jnp.float32)  # (8, Nq)
            inv_l = pl.reciprocal(l)   # exact; approx=True once tolerance allows
            o_scratch[lo:hi, cl:ch] = oh * inv_l    # 8-row-aligned scratch write

    # single output projection over all heads and batches (contraction depth 32)
    attn = lax.dot_general(wo, o_scratch[...], cdim,
                           preferred_element_type=jnp.float32) + bo      # (32, L1)

    # ---- residual (dropout12 = id) + norm12 + feed-forward, lane-dense ------
    y = _layernorm_cols(s1n + attn, g12, be12)
    ff = jnp.dot(w11_t, y, preferred_element_type=jnp.float32) + b11     # (DFF, L1)
    ff = _gelu_exact(ff)
    ff = jnp.dot(w12_t, ff, preferred_element_type=jnp.float32) + b12    # (32, L1)

    out_ref[...] = (y + ff).astype(out_ref.dtype)


# ------------------------------- wrapper -------------------------------------
def _pack_params(p):
    """Pack the 18 tiny parameter tensors into 3 arrays in kernel layout."""
    scale = 1.0 / math.sqrt(HEAD_DIM)
    wqkv_t = jnp.concatenate([(p["wq"] * scale).T, p["wk"].T, p["wv"].T], axis=0)  # (96, 32)
    wA = jnp.concatenate([p["wp"].T, wqkv_t, p["wo"], p["w11"].T],
                         axis=0).astype(jnp.float32)                               # (224, 32)
    w12_t = p["w12"].T.astype(jnp.float32)                                         # (32, 64)
    bqkv = jnp.concatenate([p["bq"] * scale, p["bk"], p["bv"]], axis=1)            # (1, 96)
    cols = dict(bp=p["bp"], bqkv=bqkv, bo=p["bo"], b11=p["b11"], b12=p["b12"],
                g12=p["g12"], be12=p["be12"], g13=p["g13"], be13=p["be13"])
    vecs = jnp.concatenate([cols[name].reshape(-1, 1) for name in _VEC_ORDER],
                           axis=0).astype(jnp.float32)                             # (384, 1)
    return wA, w12_t, vecs


def cross_transformer_forward(src1, src2, params, *, block_b=None):
    """src1, src2: (b, D_MODEL, n) float32 (PyTorch NCW). Returns (b, D_OUT, n)."""
    b, c, n = src1.shape
    assert c == D_MODEL
    if block_b is None:
        # single grid step: best on 1-TC chips (v5e/v6e); on v7x pass
        # block_b = b // 2 so each TensorCore gets one "parallel" step.
        block_b = b
    assert b % block_b == 0
    nb = b // block_b
    # keep the lane-dim block either full-extent or 128-aligned
    assert block_b == b or (block_b * n) % 128 == 0

    wA, w12_t, vecs = _pack_params(params)

    # NCW -> channels on sublanes, (batch, position) folded onto lanes
    x1_2d = jnp.transpose(src1, (1, 0, 2)).reshape(D_MODEL, b * n)
    x2_2d = jnp.transpose(src2, (1, 0, 2)).reshape(D_MODEL, b * n)

    L1 = block_b * n

    def param_spec(a):
        return pl.BlockSpec(a.shape, lambda i: (0, 0))

    kernel = functools.partial(cross_transformer_kernel, block_b=block_b, n=n)

    flops = int(2 * b * n * (2 * (D_OUT * D_MODEL + 3 * D_OUT * D_OUT)
                             + D_OUT * D_OUT + 2 * DFF * D_OUT
                             + 2 * NHEAD * n * HEAD_DIM))
    transcendentals = int(b * n * (DFF + NHEAD * n) + 3 * b * n)
    bytes_accessed = int(4 * (3 * b * D_MODEL * n + wA.size + w12_t.size + vecs.size))

    out2d = pl.pallas_call(
        kernel,
        out_shape=jax.ShapeDtypeStruct((D_OUT, b * n), src1.dtype),
        grid_spec=pltpu.PrefetchScalarGridSpec(
            num_scalar_prefetch=0,
            grid=(nb,),
            in_specs=[
                pl.BlockSpec((D_MODEL, L1), lambda i: (0, i)),   # x1 slab
                pl.BlockSpec((D_MODEL, L1), lambda i: (0, i)),   # x2 slab
                param_spec(wA), param_spec(w12_t), param_spec(vecs),
            ],
            out_specs=pl.BlockSpec((D_OUT, L1), lambda i: (0, i)),
            scratch_shapes=[pltpu.VMEM((D_OUT, L1), jnp.float32)],
        ),
        compiler_params=pltpu.CompilerParams(
            dimension_semantics=("parallel",)),   # disjoint output blocks
        cost_estimate=pl.CostEstimate(flops=flops,
                                      transcendentals=transcendentals,
                                      bytes_accessed=bytes_accessed),
    )(x1_2d, x2_2d, wA, w12_t, vecs)

    # (D_OUT, b*n) -> (b, D_OUT, n) == module's final permute(1, 2, 0)
    return jnp.transpose(out2d.reshape(D_OUT, b, n), (1, 0, 2))


# ------------------------- deterministic parameters --------------------------
def make_params(key):
    ks = jax.random.split(key, 16)
    std = 0.05

    def rnd(k, shape):
        return jax.random.normal(k, shape, dtype=jnp.float32) * std

    # Stored in "math layout": linear weights (in, out); biases (1, out).
    params = dict(
        wp=rnd(ks[0], (D_MODEL, D_OUT)), bp=rnd(ks[1], (1, D_OUT)),
        wq=rnd(ks[2], (D_OUT, D_OUT)),   bq=rnd(ks[3], (1, D_OUT)),
        wk=rnd(ks[4], (D_OUT, D_OUT)),   bk=rnd(ks[5], (1, D_OUT)),
        wv=rnd(ks[6], (D_OUT, D_OUT)),   bv=rnd(ks[7], (1, D_OUT)),
        wo=rnd(ks[8], (D_OUT, D_OUT)),   bo=rnd(ks[9], (1, D_OUT)),
        w11=rnd(ks[10], (D_OUT, DFF)),   b11=rnd(ks[11], (1, DFF)),
        w12=rnd(ks[12], (DFF, D_OUT)),   b12=rnd(ks[13], (1, D_OUT)),
        g12=jnp.ones((1, D_OUT), jnp.float32), be12=jnp.zeros((1, D_OUT), jnp.float32),
        g13=jnp.ones((1, D_OUT), jnp.float32), be13=jnp.zeros((1, D_OUT), jnp.float32),
    )
    return params


# ------------------------------ pure-JAX reference ---------------------------
def reference_forward(src1, src2, p):
    x1 = jnp.transpose(src1, (0, 2, 1))
    x2 = jnp.transpose(src2, (0, 2, 1))
    s1 = x1 @ p["wp"] + p["bp"]
    s2 = x2 @ p["wp"] + p["bp"]

    def ln(x, g, b):
        mu = jnp.mean(x, -1, keepdims=True)
        var = jnp.mean((x - mu) ** 2, -1, keepdims=True)
        return (x - mu) / jnp.sqrt(var + EPS) * g + b

    s1n = ln(s1, p["g13"], p["be13"])
    s2n = ln(s2, p["g13"], p["be13"])
    q = s1n @ p["wq"] + p["bq"]
    k = s2n @ p["wk"] + p["bk"]
    v = s2n @ p["wv"] + p["bv"]
    b_, n_, _ = q.shape
    qh = q.reshape(b_, n_, NHEAD, HEAD_DIM)
    kh = k.reshape(b_, n_, NHEAD, HEAD_DIM)
    vh = v.reshape(b_, n_, NHEAD, HEAD_DIM)
    scores = jnp.einsum("bqhd,bkhd->bhqk", qh, kh) / math.sqrt(HEAD_DIM)
    w = jax.nn.softmax(scores, axis=-1)
    attn = jnp.einsum("bhqk,bkhd->bqhd", w, vh).reshape(b_, n_, D_OUT)
    attn = attn @ p["wo"] + p["bo"]
    s1 = ln(s1n + attn, p["g12"], p["be12"])
    ff = jax.nn.gelu(s1 @ p["w11"] + p["b11"], approximate=False)
    ff = ff @ p["w12"] + p["b12"]
    s1 = s1 + ff
    return jnp.transpose(s1, (0, 2, 1))


# --------------------------------- main --------------------------------------
if __name__ == "__main__":
    key = jax.random.PRNGKey(0)
    kp, k1, k2 = jax.random.split(key, 3)

    B, N = 2, 16
    src1 = jax.random.normal(k1, (B, D_MODEL, N), dtype=jnp.float32)
    src2 = jax.random.normal(k2, (B, D_MODEL, N), dtype=jnp.float32)
    params = make_params(kp)

    out = cross_transformer_forward(src1, src2, params)   # block_b defaults to B
    out = jax.block_until_ready(out)
    assert out.shape == (B, D_OUT, N), out.shape

    ref = jax.block_until_ready(reference_forward(src1, src2, params))
    assert jnp.max(jnp.abs(out - ref)) < 1e-4, float(jnp.max(jnp.abs(out - ref)))

    print("KERNEL_OK")
</pallas_src>

<mosaic_0001>
module attributes {stable_mosaic.version = 11 : i64} {
  func.func @cross_transformer_kernel(%arg0: i32, %arg1: memref<32x32xf32, #tpu.memory_space<vmem>>, %arg2: memref<32x32xf32, #tpu.memory_space<vmem>>, %arg3: memref<224x32xf32, #tpu.memory_space<vmem>>, %arg4: memref<32x64xf32, #tpu.memory_space<vmem>>, %arg5: memref<384x1xf32, #tpu.memory_space<vmem>>, %arg6: memref<32x32xf32, #tpu.memory_space<vmem>>, %arg7: memref<32x32xf32, #tpu.memory_space<vmem>>) attributes {dimension_semantics = [#tpu.dimension_semantics<parallel>], iteration_bounds = array<i64: 1>, scalar_prefetch = 0 : i64, scratch_operands = 1 : i64, tpu.core_type = #tpu.core_type<tc>, window_params = [{transform_indices = @transform_0, window_bounds = array<i64: 32, 32>}, {transform_indices = @transform_1, window_bounds = array<i64: 32, 32>}, {pipeline_mode = #tpu.pipeline_mode<synchronous>, transform_indices = @transform_2, window_bounds = array<i64: 224, 32>}, {pipeline_mode = #tpu.pipeline_mode<synchronous>, transform_indices = @transform_3, window_bounds = array<i64: 32, 64>}, {pipeline_mode = #tpu.pipeline_mode<synchronous>, transform_indices = @transform_4, window_bounds = array<i64: 384, 1>}, {transform_indices = @transform_5, window_bounds = array<i64: 32, 32>}]} {
    %c0 = arith.constant 0 : index
    %c0_0 = arith.constant 0 : index
    %0 = vector.load %arg3[%c0, %c0_0] : memref<224x32xf32, #tpu.memory_space<vmem>>, vector<224x32xf32>
    %1 = vector.extract_strided_slice %0 {offsets = [0, 0], sizes = [32, 32], strides = [1, 1]} : vector<224x32xf32> to vector<32x32xf32>
    %2 = vector.extract_strided_slice %0 {offsets = [32, 0], sizes = [96, 32], strides = [1, 1]} : vector<224x32xf32> to vector<96x32xf32>
    %3 = vector.extract_strided_slice %0 {offsets = [128, 0], sizes = [32, 32], strides = [1, 1]} : vector<224x32xf32> to vector<32x32xf32>
    %4 = vector.extract_strided_slice %0 {offsets = [160, 0], sizes = [64, 32], strides = [1, 1]} : vector<224x32xf32> to vector<64x32xf32>
    %c0_1 = arith.constant 0 : index
    %c0_2 = arith.constant 0 : index
    %5 = vector.load %arg4[%c0_1, %c0_2] : memref<32x64xf32, #tpu.memory_space<vmem>>, vector<32x64xf32>
    %c0_3 = arith.constant 0 : index
    %c0_4 = arith.constant 0 : index
    %6 = vector.load %arg5[%c0_3, %c0_4] : memref<384x1xf32, #tpu.memory_space<vmem>>, vector<384x1xf32>
    %7 = vector.extract_strided_slice %6 {offsets = [0, 0], sizes = [32, 1], strides = [1, 1]} : vector<384x1xf32> to vector<32x1xf32>
    %8 = vector.extract_strided_slice %6 {offsets = [32, 0], sizes = [96, 1], strides = [1, 1]} : vector<384x1xf32> to vector<96x1xf32>
    %9 = vector.extract_strided_slice %6 {offsets = [128, 0], sizes = [32, 1], strides = [1, 1]} : vector<384x1xf32> to vector<32x1xf32>
    %10 = vector.extract_strided_slice %6 {offsets = [160, 0], sizes = [64, 1], strides = [1, 1]} : vector<384x1xf32> to vector<64x1xf32>
    %11 = vector.extract_strided_slice %6 {offsets = [224, 0], sizes = [32, 1], strides = [1, 1]} : vector<384x1xf32> to vector<32x1xf32>
    %12 = vector.extract_strided_slice %6 {offsets = [256, 0], sizes = [32, 1], strides = [1, 1]} : vector<384x1xf32> to vector<32x1xf32>
    %13 = vector.extract_strided_slice %6 {offsets = [288, 0], sizes = [32, 1], strides = [1, 1]} : vector<384x1xf32> to vector<32x1xf32>
    %14 = vector.extract_strided_slice %6 {offsets = [320, 0], sizes = [32, 1], strides = [1, 1]} : vector<384x1xf32> to vector<32x1xf32>
    %15 = vector.extract_strided_slice %6 {offsets = [352, 0], sizes = [32, 1], strides = [1, 1]} : vector<384x1xf32> to vector<32x1xf32>
    %c0_5 = arith.constant 0 : index
    %c0_6 = arith.constant 0 : index
    %16 = vector.load %arg1[%c0_5, %c0_6] : memref<32x32xf32, #tpu.memory_space<vmem>>, vector<32x32xf32>
    %c0_7 = arith.constant 0 : index
    %c0_8 = arith.constant 0 : index
    %17 = vector.load %arg2[%c0_7, %c0_8] : memref<32x32xf32, #tpu.memory_space<vmem>>, vector<32x32xf32>
    %18 = tpu.concatenate %16, %17 in 1 : vector<32x32xf32>, vector<32x32xf32> -> vector<32x64xf32>
    %cst = arith.constant dense<0.000000e+00> : vector<32x64xf32>
    %19 = tpu.matmul %1, %18, %cst {dimension_numbers = #tpu.dot_dimension_numbers<[1], [0], [0], [1], [0, 0, 1, 1], [], []>} : vector<32x32xf32>, vector<32x64xf32>, vector<32x64xf32> -> vector<32x64xf32>
    %20 = vector.broadcast %7 : vector<32x1xf32> to vector<32x64xf32>
    %21 = arith.addf %19, %20 : vector<32x64xf32>
    %cst_9 = arith.constant dense<0.000000e+00> : vector<64xf32>
    %22 = vector.multi_reduction <add>, %21, %cst_9 [0] : vector<32x64xf32> to vector<64xf32>
    %23 = vector.shape_cast %22 : vector<64xf32> to vector<1x64xf32>
    %cst_10 = arith.constant 3.200000e+01 : f32
    %24 = vector.broadcast %cst_10 : f32 to vector<1x64xf32>
    %25 = arith.divf %23, %24 : vector<1x64xf32>
    %26 = vector.broadcast %25 : vector<1x64xf32> to vector<32x64xf32>
    %27 = arith.subf %21, %26 : vector<32x64xf32>
    %28 = arith.mulf %27, %27 : vector<32x64xf32>
    %cst_11 = arith.constant dense<0.000000e+00> : vector<64xf32>
    %29 = vector.multi_reduction <add>, %28, %cst_11 [0] : vector<32x64xf32> to vector<64xf32>
    %30 = vector.shape_cast %29 : vector<64xf32> to vector<1x64xf32>
    %cst_12 = arith.constant 3.200000e+01 : f32
    %31 = vector.broadcast %cst_12 : f32 to vector<1x64xf32>
    %32 = arith.divf %30, %31 : vector<1x64xf32>
    %33 = vector.broadcast %25 : vector<1x64xf32> to vector<32x64xf32>
    %34 = arith.subf %21, %33 : vector<32x64xf32>
    %cst_13 = arith.constant 9.99999974E-6 : f32
    %35 = vector.broadcast %cst_13 : f32 to vector<1x64xf32>
    %36 = arith.addf %32, %35 : vector<1x64xf32>
    %37 = math.rsqrt %36 : vector<1x64xf32>
    %38 = vector.broadcast %37 : vector<1x64xf32> to vector<32x64xf32>
    %39 = arith.mulf %34, %38 : vector<32x64xf32>
    %40 = vector.broadcast %14 : vector<32x1xf32> to vector<32x64xf32>
    %41 = arith.mulf %39, %40 : vector<32x64xf32>
    %42 = vector.broadcast %15 : vector<32x1xf32> to vector<32x64xf32>
    %43 = arith.addf %41, %42 : vector<32x64xf32>
    %cst_14 = arith.constant dense<0.000000e+00> : vector<96x64xf32>
    %44 = tpu.matmul %2, %43, %cst_14 {dimension_numbers = #tpu.dot_dimension_numbers<[1], [0], [0], [1], [0, 0, 1, 1], [], []>} : vector<96x32xf32>, vector<32x64xf32>, vector<96x64xf32> -> vector<96x64xf32>
    %45 = vector.broadcast %8 : vector<96x1xf32> to vector<96x64xf32>
    %46 = arith.addf %44, %45 : vector<96x64xf32>
    %47 = vector.extract_strided_slice %43 {offsets = [0, 0], sizes = [32, 32], strides = [1, 1]} : vector<32x64xf32> to vector<32x32xf32>
    %48 = vector.extract_strided_slice %46 {offsets = [0, 0], sizes = [32, 32], strides = [1, 1]} : vector<96x64xf32> to vector<32x32xf32>
    %49 = vector.extract_strided_slice %46 {offsets = [32, 32], sizes = [32, 32], strides = [1, 1]} : vector<96x64xf32> to vector<32x32xf32>
    %50 = vector.extract_strided_slice %46 {offsets = [64, 32], sizes = [32, 32], strides = [1, 1]} : vector<96x64xf32> to vector<32x32xf32>
    %51 = vector.extract_strided_slice %48 {offsets = [0, 0], sizes = [8, 16], strides = [1, 1]} : vector<32x32xf32> to vector<8x16xf32>
    %52 = vector.extract_strided_slice %49 {offsets = [0, 0], sizes = [8, 16], strides = [1, 1]} : vector<32x32xf32> to vector<8x16xf32>
    %53 = vector.extract_strided_slice %50 {offsets = [0, 0], sizes = [8, 16], strides = [1, 1]} : vector<32x32xf32> to vector<8x16xf32>
    %cst_15 = arith.constant dense<0.000000e+00> : vector<16x16xf32>
    %54 = tpu.matmul %52, %51, %cst_15 {dimension_numbers = #tpu.dot_dimension_numbers<[0], [0], [1], [1], [0, 1, 1, 1], [], []>} : vector<8x16xf32>, vector<8x16xf32>, vector<16x16xf32> -> vector<16x16xf32>
    %cst_16 = arith.constant dense<0xFF800000> : vector<16xf32>
    %55 = vector.multi_reduction <maximumf>, %54, %cst_16 [0] : vector<16x16xf32> to vector<16xf32>
    %56 = vector.shape_cast %55 : vector<16xf32> to vector<1x16xf32>
    %57 = vector.broadcast %56 : vector<1x16xf32> to vector<16x16xf32>
    %58 = arith.subf %54, %57 : vector<16x16xf32>
    %59 = math.exp %58 : vector<16x16xf32>
    %cst_17 = arith.constant dense<0.000000e+00> : vector<16xf32>
    %60 = vector.multi_reduction <add>, %59, %cst_17 [0] : vector<16x16xf32> to vector<16xf32>
    %61 = vector.shape_cast %60 : vector<16xf32> to vector<1x16xf32>
    %cst_18 = arith.constant dense<0.000000e+00> : vector<8x16xf32>
    %62 = tpu.matmul %53, %59, %cst_18 {dimension_numbers = #tpu.dot_dimension_numbers<[1], [0], [0], [1], [0, 0, 1, 1], [], []>} : vector<8x16xf32>, vector<16x16xf32>, vector<8x16xf32> -> vector<8x16xf32>
    %63 = tpu.reciprocal %61 : vector<1x16xf32> -> vector<1x16xf32>
    %64 = vector.broadcast %63 : vector<1x16xf32> to vector<8x16xf32>
    %65 = arith.mulf %62, %64 : vector<8x16xf32>
    %c0_19 = arith.constant 0 : index
    %c0_20 = arith.constant 0 : index
    %66 = vector.load %arg7[%c0_19, %c0_20] : memref<32x32xf32, #tpu.memory_space<vmem>>, vector<8x16xf32>
    tpu.vector_store %arg7[%c0_19, %c0_20], %65 {strides = array<i32>} : memref<32x32xf32, #tpu.memory_space<vmem>>, vector<8x16xf32>,
    %67 = vector.extract_strided_slice %48 {offsets = [8, 0], sizes = [8, 16], strides = [1, 1]} : vector<32x32xf32> to vector<8x16xf32>
    %68 = vector.extract_strided_slice %49 {offsets = [8, 0], sizes = [8, 16], strides = [1, 1]} : vector<32x32xf32> to vector<8x16xf32>
    %69 = vector.extract_strided_slice %50 {offsets = [8, 0], sizes = [8, 16], strides = [1, 1]} : vector<32x32xf32> to vector<8x16xf32>
    %cst_21 = arith.constant dense<0.000000e+00> : vector<16x16xf32>
    %70 = tpu.matmul %68, %67, %cst_21 {dimension_numbers = #tpu.dot_dimension_numbers<[0], [0], [1], [1], [0, 1, 1, 1], [], []>} : vector<8x16xf32>, vector<8x16xf32>, vector<16x16xf32> -> vector<16x16xf32>
    %cst_22 = arith.constant dense<0xFF800000> : vector<16xf32>
    %71 = vector.multi_reduction <maximumf>, %70, %cst_22 [0] : vector<16x16xf32> to vector<16xf32>
    %72 = vector.shape_cast %71 : vector<16xf32> to vector<1x16xf32>
    %73 = vector.broadcast %72 : vector<1x16xf32> to vector<16x16xf32>
    %74 = arith.subf %70, %73 : vector<16x16xf32>
    %75 = math.exp %74 : vector<16x16xf32>
    %cst_23 = arith.constant dense<0.000000e+00> : vector<16xf32>
    %76 = vector.multi_reduction <add>, %75, %cst_23 [0] : vector<16x16xf32> to vector<16xf32>
    %77 = vector.shape_cast %76 : vector<16xf32> to vector<1x16xf32>
    %cst_24 = arith.constant dense<0.000000e+00> : vector<8x16xf32>
    %78 = tpu.matmul %69, %75, %cst_24 {dimension_numbers = #tpu.dot_dimension_numbers<[1], [0], [0], [1], [0, 0, 1, 1], [], []>} : vector<8x16xf32>, vector<16x16xf32>, vector<8x16xf32> -> vector<8x16xf32>
    %79 = tpu.reciprocal %77 : vector<1x16xf32> -> vector<1x16xf32>
    %80 = vector.broadcast %79 : vector<1x16xf32> to vector<8x16xf32>
    %81 = arith.mulf %78, %80 : vector<8x16xf32>
    %c8 = arith.constant 8 : index
    %c0_25 = arith.constant 0 : index
    %82 = vector.load %arg7[%c8, %c0_25] : memref<32x32xf32, #tpu.memory_space<vmem>>, vector<8x16xf32>
    tpu.vector_store %arg7[%c8, %c0_25], %81 {strides = array<i32>} : memref<32x32xf32, #tpu.memory_space<vmem>>, vector<8x16xf32>,
    %83 = vector.extract_strided_slice %48 {offsets = [16, 0], sizes = [8, 16], strides = [1, 1]} : vector<32x32xf32> to vector<8x16xf32>
    %84 = vector.extract_strided_slice %49 {offsets = [16, 0], sizes = [8, 16], strides = [1, 1]} : vector<32x32xf32> to vector<8x16xf32>
    %85 = vector.extract_strided_slice %50 {offsets = [16, 0], sizes = [8, 16], strides = [1, 1]} : vector<32x32xf32> to vector<8x16xf32>
    %cst_26 = arith.constant dense<0.000000e+00> : vector<16x16xf32>
    %86 = tpu.matmul %84, %83, %cst_26 {dimension_numbers = #tpu.dot_dimension_numbers<[0], [0], [1], [1], [0, 1, 1, 1], [], []>} : vector<8x16xf32>, vector<8x16xf32>, vector<16x16xf32> -> vector<16x16xf32>
    %cst_27 = arith.constant dense<0xFF800000> : vector<16xf32>
    %87 = vector.multi_reduction <maximumf>, %86, %cst_27 [0] : vector<16x16xf32> to vector<16xf32>
    %88 = vector.shape_cast %87 : vector<16xf32> to vector<1x16xf32>
    %89 = vector.broadcast %88 : vector<1x16xf32> to vector<16x16xf32>
    %90 = arith.subf %86, %89 : vector<16x16xf32>
    %91 = math.exp %90 : vector<16x16xf32>
    %cst_28 = arith.constant dense<0.000000e+00> : vector<16xf32>
    %92 = vector.multi_reduction <add>, %91, %cst_28 [0] : vector<16x16xf32> to vector<16xf32>
    %93 = vector.shape_cast %92 : vector<16xf32> to vector<1x16xf32>
    %cst_29 = arith.constant dense<0.000000e+00> : vector<8x16xf32>
    %94 = tpu.matmul %85, %91, %cst_29 {dimension_numbers = #tpu.dot_dimension_numbers<[1], [0], [0], [1], [0, 0, 1, 1], [], []>} : vector<8x16xf32>, vector<16x16xf32>, vector<8x16xf32> -> vector<8x16xf32>
    %95 = tpu.reciprocal %93 : vector<1x16xf32> -> vector<1x16xf32>
    %96 = vector.broadcast %95 : vector<1x16xf32> to vector<8x16xf32>
    %97 = arith.mulf %94, %96 : vector<8x16xf32>
    %c16 = arith.constant 16 : index
    %c0_30 = arith.constant 0 : index
    %98 = vector.load %arg7[%c16, %c0_30] : memref<32x32xf32, #tpu.memory_space<vmem>>, vector<8x16xf32>
    tpu.vector_store %arg7[%c16, %c0_30], %97 {strides = array<i32>} : memref<32x32xf32, #tpu.memory_space<vmem>>, vector<8x16xf32>,
    %99 = vector.extract_strided_slice %48 {offsets = [24, 0], sizes = [8, 16], strides = [1, 1]} : vector<32x32xf32> to vector<8x16xf32>
    %100 = vector.extract_strided_slice %49 {offsets = [24, 0], sizes = [8, 16], strides = [1, 1]} : vector<32x32xf32> to vector<8x16xf32>
    %101 = vector.extract_strided_slice %50 {offsets = [24, 0], sizes = [8, 16], strides = [1, 1]} : vector<32x32xf32> to vector<8x16xf32>
    %cst_31 = arith.constant dense<0.000000e+00> : vector<16x16xf32>
    %102 = tpu.matmul %100, %99, %cst_31 {dimension_numbers = #tpu.dot_dimension_numbers<[0], [0], [1], [1], [0, 1, 1, 1], [], []>} : vector<8x16xf32>, vector<8x16xf32>, vector<16x16xf32> -> vector<16x16xf32>
    %cst_32 = arith.constant dense<0xFF800000> : vector<16xf32>
    %103 = vector.multi_reduction <maximumf>, %102, %cst_32 [0] : vector<16x16xf32> to vector<16xf32>
    %104 = vector.shape_cast %103 : vector<16xf32> to vector<1x16xf32>
    %105 = vector.broadcast %104 : vector<1x16xf32> to vector<16x16xf32>
    %106 = arith.subf %102, %105 : vector<16x16xf32>
    %107 = math.exp %106 : vector<16x16xf32>
    %cst_33 = arith.constant dense<0.000000e+00> : vector<16xf32>
    %108 = vector.multi_reduction <add>, %107, %cst_33 [0] : vector<16x16xf32> to vector<16xf32>
    %109 = vector.shape_cast %108 : vector<16xf32> to vector<1x16xf32>
    %cst_34 = arith.constant dense<0.000000e+00> : vector<8x16xf32>
    %110 = tpu.matmul %101, %107, %cst_34 {dimension_numbers = #tpu.dot_dimension_numbers<[1], [0], [0], [1], [0, 0, 1, 1], [], []>} : vector<8x16xf32>, vector<16x16xf32>, vector<8x16xf32> -> vector<8x16xf32>
    %111 = tpu.reciprocal %109 : vector<1x16xf32> -> vector<1x16xf32>
    %112 = vector.broadcast %111 : vector<1x16xf32> to vector<8x16xf32>
    %113 = arith.mulf %110, %112 : vector<8x16xf32>
    %c24 = arith.constant 24 : index
    %c0_35 = arith.constant 0 : index
    %114 = vector.load %arg7[%c24, %c0_35] : memref<32x32xf32, #tpu.memory_space<vmem>>, vector<8x16xf32>
    tpu.vector_store %arg7[%c24, %c0_35], %113 {strides = array<i32>} : memref<32x32xf32, #tpu.memory_space<vmem>>, vector<8x16xf32>,
    %115 = vector.extract_strided_slice %48 {offsets = [0, 16], sizes = [8, 16], strides = [1, 1]} : vector<32x32xf32> to vector<8x16xf32>
    %116 = vector.extract_strided_slice %49 {offsets = [0, 16], sizes = [8, 16], strides = [1, 1]} : vector<32x32xf32> to vector<8x16xf32>
    %117 = vector.extract_strided_slice %50 {offsets = [0, 16], sizes = [8, 16], strides = [1, 1]} : vector<32x32xf32> to vector<8x16xf32>
    %cst_36 = arith.constant dense<0.000000e+00> : vector<16x16xf32>
    %118 = tpu.matmul %116, %115, %cst_36 {dimension_numbers = #tpu.dot_dimension_numbers<[0], [0], [1], [1], [0, 1, 1, 1], [], []>} : vector<8x16xf32>, vector<8x16xf32>, vector<16x16xf32> -> vector<16x16xf32>
    %cst_37 = arith.constant dense<0xFF800000> : vector<16xf32>
    %119 = vector.multi_reduction <maximumf>, %118, %cst_37 [0] : vector<16x16xf32> to vector<16xf32>
    %120 = vector.shape_cast %119 : vector<16xf32> to vector<1x16xf32>
    %121 = vector.broadcast %120 : vector<1x16xf32> to vector<16x16xf32>
    %122 = arith.subf %118, %121 : vector<16x16xf32>
    %123 = math.exp %122 : vector<16x16xf32>
    %cst_38 = arith.constant dense<0.000000e+00> : vector<16xf32>
    %124 = vector.multi_reduction <add>, %123, %cst_38 [0] : vector<16x16xf32> to vector<16xf32>
    %125 = vector.shape_cast %124 : vector<16xf32> to vector<1x16xf32>
    %cst_39 = arith.constant dense<0.000000e+00> : vector<8x16xf32>
    %126 = tpu.matmul %117, %123, %cst_39 {dimension_numbers = #tpu.dot_dimension_numbers<[1], [0], [0], [1], [0, 0, 1, 1], [], []>} : vector<8x16xf32>, vector<16x16xf32>, vector<8x16xf32> -> vector<8x16xf32>
    %127 = tpu.reciprocal %125 : vector<1x16xf32> -> vector<1x16xf32>
    %128 = vector.broadcast %127 : vector<1x16xf32> to vector<8x16xf32>
    %129 = arith.mulf %126, %128 : vector<8x16xf32>
    %c0_40 = arith.constant 0 : index
    %c16_41 = arith.constant 16 : index
    %130 = vector.load %arg7[%c0_40, %c16_41] : memref<32x32xf32, #tpu.memory_space<vmem>>, vector<8x16xf32>
    tpu.vector_store %arg7[%c0_40, %c16_41], %129 {strides = array<i32>} : memref<32x32xf32, #tpu.memory_space<vmem>>, vector<8x16xf32>,
    %131 = vector.extract_strided_slice %48 {offsets = [8, 16], sizes = [8, 16], strides = [1, 1]} : vector<32x32xf32> to vector<8x16xf32>
    %132 = vector.extract_strided_slice %49 {offsets = [8, 16], sizes = [8, 16], strides = [1, 1]} : vector<32x32xf32> to vector<8x16xf32>
    %133 = vector.extract_strided_slice %50 {offsets = [8, 16], sizes = [8, 16], strides = [1, 1]} : vector<32x32xf32> to vector<8x16xf32>
    %cst_42 = arith.constant dense<0.000000e+00> : vector<16x16xf32>
    %134 = tpu.matmul %132, %131, %cst_42 {dimension_numbers = #tpu.dot_dimension_numbers<[0], [0], [1], [1], [0, 1, 1, 1], [], []>} : vector<8x16xf32>, vector<8x16xf32>, vector<16x16xf32> -> vector<16x16xf32>
    %cst_43 = arith.constant dense<0xFF800000> : vector<16xf32>
    %135 = vector.multi_reduction <maximumf>, %134, %cst_43 [0] : vector<16x16xf32> to vector<16xf32>
    %136 = vector.shape_cast %135 : vector<16xf32> to vector<1x16xf32>
    %137 = vector.broadcast %136 : vector<1x16xf32> to vector<16x16xf32>
    %138 = arith.subf %134, %137 : vector<16x16xf32>
    %139 = math.exp %138 : vector<16x16xf32>
    %cst_44 = arith.constant dense<0.000000e+00> : vector<16xf32>
    %140 = vector.multi_reduction <add>, %139, %cst_44 [0] : vector<16x16xf32> to vector<16xf32>
    %141 = vector.shape_cast %140 : vector<16xf32> to vector<1x16xf32>
    %cst_45 = arith.constant dense<0.000000e+00> : vector<8x16xf32>
    %142 = tpu.matmul %133, %139, %cst_45 {dimension_numbers = #tpu.dot_dimension_numbers<[1], [0], [0], [1], [0, 0, 1, 1], [], []>} : vector<8x16xf32>, vector<16x16xf32>, vector<8x16xf32> -> vector<8x16xf32>
    %143 = tpu.reciprocal %141 : vector<1x16xf32> -> vector<1x16xf32>
    %144 = vector.broadcast %143 : vector<1x16xf32> to vector<8x16xf32>
    %145 = arith.mulf %142, %144 : vector<8x16xf32>
    %c8_46 = arith.constant 8 : index
    %c16_47 = arith.constant 16 : index
    %146 = vector.load %arg7[%c8_46, %c16_47] : memref<32x32xf32, #tpu.memory_space<vmem>>, vector<8x16xf32>
    tpu.vector_store %arg7[%c8_46, %c16_47], %145 {strides = array<i32>} : memref<32x32xf32, #tpu.memory_space<vmem>>, vector<8x16xf32>,
    %147 = vector.extract_strided_slice %48 {offsets = [16, 16], sizes = [8, 16], strides = [1, 1]} : vector<32x32xf32> to vector<8x16xf32>
    %148 = vector.extract_strided_slice %49 {offsets = [16, 16], sizes = [8, 16], strides = [1, 1]} : vector<32x32xf32> to vector<8x16xf32>
    %149 = vector.extract_strided_slice %50 {offsets = [16, 16], sizes = [8, 16], strides = [1, 1]} : vector<32x32xf32> to vector<8x16xf32>
    %cst_48 = arith.constant dense<0.000000e+00> : vector<16x16xf32>
    %150 = tpu.matmul %148, %147, %cst_48 {dimension_numbers = #tpu.dot_dimension_numbers<[0], [0], [1], [1], [0, 1, 1, 1], [], []>} : vector<8x16xf32>, vector<8x16xf32>, vector<16x16xf32> -> vector<16x16xf32>
    %cst_49 = arith.constant dense<0xFF800000> : vector<16xf32>
    %151 = vector.multi_reduction <maximumf>, %150, %cst_49 [0] : vector<16x16xf32> to vector<16xf32>
    %152 = vector.shape_cast %151 : vector<16xf32> to vector<1x16xf32>
    %153 = vector.broadcast %152 : vector<1x16xf32> to vector<16x16xf32>
    %154 = arith.subf %150, %153 : vector<16x16xf32>
    %155 = math.exp %154 : vector<16x16xf32>
    %cst_50 = arith.constant dense<0.000000e+00> : vector<16xf32>
    %156 = vector.multi_reduction <add>, %155, %cst_50 [0] : vector<16x16xf32> to vector<16xf32>
    %157 = vector.shape_cast %156 : vector<16xf32> to vector<1x16xf32>
    %cst_51 = arith.constant dense<0.000000e+00> : vector<8x16xf32>
    %158 = tpu.matmul %149, %155, %cst_51 {dimension_numbers = #tpu.dot_dimension_numbers<[1], [0], [0], [1], [0, 0, 1, 1], [], []>} : vector<8x16xf32>, vector<16x16xf32>, vector<8x16xf32> -> vector<8x16xf32>
    %159 = tpu.reciprocal %157 : vector<1x16xf32> -> vector<1x16xf32>
    %160 = vector.broadcast %159 : vector<1x16xf32> to vector<8x16xf32>
    %161 = arith.mulf %158, %160 : vector<8x16xf32>
    %c16_52 = arith.constant 16 : index
    %c16_53 = arith.constant 16 : index
    %162 = vector.load %arg7[%c16_52, %c16_53] : memref<32x32xf32, #tpu.memory_space<vmem>>, vector<8x16xf32>
    tpu.vector_store %arg7[%c16_52, %c16_53], %161 {strides = array<i32>} : memref<32x32xf32, #tpu.memory_space<vmem>>, vector<8x16xf32>,
    %163 = vector.extract_strided_slice %48 {offsets = [24, 16], sizes = [8, 16], strides = [1, 1]} : vector<32x32xf32> to vector<8x16xf32>
    %164 = vector.extract_strided_slice %49 {offsets = [24, 16], sizes = [8, 16], strides = [1, 1]} : vector<32x32xf32> to vector<8x16xf32>
    %165 = vector.extract_strided_slice %50 {offsets = [24, 16], sizes = [8, 16], strides = [1, 1]} : vector<32x32xf32> to vector<8x16xf32>
    %cst_54 = arith.constant dense<0.000000e+00> : vector<16x16xf32>
    %166 = tpu.matmul %164, %163, %cst_54 {dimension_numbers = #tpu.dot_dimension_numbers<[0], [0], [1], [1], [0, 1, 1, 1], [], []>} : vector<8x16xf32>, vector<8x16xf32>, vector<16x16xf32> -> vector<16x16xf32>
    %cst_55 = arith.constant dense<0xFF800000> : vector<16xf32>
    %167 = vector.multi_reduction <maximumf>, %166, %cst_55 [0] : vector<16x16xf32> to vector<16xf32>
    %168 = vector.shape_cast %167 : vector<16xf32> to vector<1x16xf32>
    %169 = vector.broadcast %168 : vector<1x16xf32> to vector<16x16xf32>
    %170 = arith.subf %166, %169 : vector<16x16xf32>
    %171 = math.exp %170 : vector<16x16xf32>
    %cst_56 = arith.constant dense<0.000000e+00> : vector<16xf32>
    %172 = vector.multi_reduction <add>, %171, %cst_56 [0] : vector<16x16xf32> to vector<16xf32>
    %173 = vector.shape_cast %172 : vector<16xf32> to vector<1x16xf32>
    %cst_57 = arith.constant dense<0.000000e+00> : vector<8x16xf32>
    %174 = tpu.matmul %165, %171, %cst_57 {dimension_numbers = #tpu.dot_dimension_numbers<[1], [0], [0], [1], [0, 0, 1, 1], [], []>} : vector<8x16xf32>, vector<16x16xf32>, vector<8x16xf32> -> vector<8x16xf32>
    %175 = tpu.reciprocal %173 : vector<1x16xf32> -> vector<1x16xf32>
    %176 = vector.broadcast %175 : vector<1x16xf32> to vector<8x16xf32>
    %177 = arith.mulf %174, %176 : vector<8x16xf32>
    %c24_58 = arith.constant 24 : index
    %c16_59 = arith.constant 16 : index
    %178 = vector.load %arg7[%c24_58, %c16_59] : memref<32x32xf32, #tpu.memory_space<vmem>>, vector<8x16xf32>
    tpu.vector_store %arg7[%c24_58, %c16_59], %177 {strides = array<i32>} : memref<32x32xf32, #tpu.memory_space<vmem>>, vector<8x16xf32>,
    %c0_60 = arith.constant 0 : index
    %c0_61 = arith.constant 0 : index
    %179 = vector.load %arg7[%c0_60, %c0_61] : memref<32x32xf32, #tpu.memory_space<vmem>>, vector<32x32xf32>
    %cst_62 = arith.constant dense<0.000000e+00> : vector<32x32xf32>
    %180 = tpu.matmul %3, %179, %cst_62 {dimension_numbers = #tpu.dot_dimension_numbers<[0], [0], [1], [1], [0, 1, 1, 1], [], []>} : vector<32x32xf32>, vector<32x32xf32>, vector<32x32xf32> -> vector<32x32xf32>
    %181 = vector.broadcast %9 : vector<32x1xf32> to vector<32x32xf32>
    %182 = arith.addf %180, %181 : vector<32x32xf32>
    %183 = arith.addf %47, %182 : vector<32x32xf32>
    %cst_63 = arith.constant dense<0.000000e+00> : vector<32xf32>
    %184 = vector.multi_reduction <add>, %183, %cst_63 [0] : vector<32x32xf32> to vector<32xf32>
    %185 = vector.shape_cast %184 : vector<32xf32> to vector<1x32xf32>
    %cst_64 = arith.constant 3.200000e+01 : f32
    %186 = vector.broadcast %cst_64 : f32 to vector<1x32xf32>
    %187 = arith.divf %185, %186 : vector<1x32xf32>
    %188 = vector.broadcast %187 : vector<1x32xf32> to vector<32x32xf32>
    %189 = arith.subf %183, %188 : vector<32x32xf32>
    %190 = arith.mulf %189, %189 : vector<32x32xf32>
    %cst_65 = arith.constant dense<0.000000e+00> : vector<32xf32>
    %191 = vector.multi_reduction <add>, %190, %cst_65 [0] : vector<32x32xf32> to vector<32xf32>
    %192 = vector.shape_cast %191 : vector<32xf32> to vector<1x32xf32>
    %cst_66 = arith.constant 3.200000e+01 : f32
    %193 = vector.broadcast %cst_66 : f32 to vector<1x32xf32>
    %194 = arith.divf %192, %193 : vector<1x32xf32>
    %195 = vector.broadcast %187 : vector<1x32xf32> to vector<32x32xf32>
    %196 = arith.subf %183, %195 : vector<32x32xf32>
    %cst_67 = arith.constant 9.99999974E-6 : f32
    %197 = vector.broadcast %cst_67 : f32 to vector<1x32xf32>
    %198 = arith.addf %194, %197 : vector<1x32xf32>
    %199 = math.rsqrt %198 : vector<1x32xf32>
    %200 = vector.broadcast %199 : vector<1x32xf32> to vector<32x32xf32>
    %201 = arith.mulf %196, %200 : vector<32x32xf32>
    %202 = vector.broadcast %12 : vector<32x1xf32> to vector<32x32xf32>
    %203 = arith.mulf %201, %202 : vector<32x32xf32>
    %204 = vector.broadcast %13 : vector<32x1xf32> to vector<32x32xf32>
    %205 = arith.addf %203, %204 : vector<32x32xf32>
    %cst_68 = arith.constant dense<0.000000e+00> : vector<64x32xf32>
    %206 = tpu.matmul %4, %205, %cst_68 {dimension_numbers = #tpu.dot_dimension_numbers<[1], [0], [0], [1], [0, 0, 1, 1], [], []>} : vector<64x32xf32>, vector<32x32xf32>, vector<64x32xf32> -> vector<64x32xf32>
    %207 = vector.broadcast %10 : vector<64x1xf32> to vector<64x32xf32>
    %208 = arith.addf %206, %207 : vector<64x32xf32>
    %cst_69 = arith.constant 5.000000e-01 : f32
    %209 = vector.broadcast %cst_69 : f32 to vector<64x32xf32>
    %210 = arith.mulf %209, %208 : vector<64x32xf32>
    %cst_70 = arith.constant 0.707106769 : f32
    %211 = vector.broadcast %cst_70 : f32 to vector<64x32xf32>
    %212 = arith.mulf %208, %211 : vector<64x32xf32>
    %213 = math.erf %212 : vector<64x32xf32>
    %cst_71 = arith.constant 1.000000e+00 : f32
    %214 = vector.broadcast %cst_71 : f32 to vector<64x32xf32>
    %215 = arith.addf %214, %213 : vector<64x32xf32>
    %216 = arith.mulf %210, %215 : vector<64x32xf32>
    %cst_72 = arith.constant dense<0.000000e+00> : vector<32x32xf32>
    %217 = tpu.matmul %5, %216, %cst_72 {dimension_numbers = #tpu.dot_dimension_numbers<[1], [0], [0], [1], [0, 0, 1, 1], [], []>} : vector<32x64xf32>, vector<64x32xf32>, vector<32x32xf32> -> vector<32x32xf32>
    %218 = vector.broadcast %11 : vector<32x1xf32> to vector<32x32xf32>
    %219 = arith.addf %217, %218 : vector<32x32xf32>
    %220 = arith.addf %205, %219 : vector<32x32xf32>
    %c0_73 = arith.constant 0 : index
    %c0_74 = arith.constant 0 : index
    %221 = vector.load %arg6[%c0_73, %c0_74] : memref<32x32xf32, #tpu.memory_space<vmem>>, vector<32x32xf32>
    tpu.vector_store %arg6[%c0_73, %c0_74], %220 {strides = array<i32>} : memref<32x32xf32, #tpu.memory_space<vmem>>, vector<32x32xf32>,
    return
  }
  func.func @transform_0(%arg0: i32) -> (i32, i32) {
    %c0_i32 = arith.constant 0 : i32
    %c0_i32_0 = arith.constant 0 : i32
    return %c0_i32, %arg0 : i32, i32
  }
  func.func @transform_1(%arg0: i32) -> (i32, i32) {
    %c0_i32 = arith.constant 0 : i32
    %c0_i32_0 = arith.constant 0 : i32
    return %c0_i32, %arg0 : i32, i32
  }
  func.func @transform_2(%arg0: i32) -> (i32, i32) {
    %c0_i32 = arith.constant 0 : i32
    %c0_i32_0 = arith.constant 0 : i32
    %c0_i32_1 = arith.constant 0 : i32
    return %c0_i32, %c0_i32_0 : i32, i32
  }
  func.func @transform_3(%arg0: i32) -> (i32, i32) {
    %c0_i32 = arith.constant 0 : i32
    %c0_i32_0 = arith.constant 0 : i32
    %c0_i32_1 = arith.constant 0 : i32
    return %c0_i32, %c0_i32_0 : i32, i32
  }
  func.func @transform_4(%arg0: i32) -> (i32, i32) {
    %c0_i32 = arith.constant 0 : i32
    %c0_i32_0 = arith.constant 0 : i32
    %c0_i32_1 = arith.constant 0 : i32
    return %c0_i32, %c0_i32_0 : i32, i32
  }
  func.func @transform_5(%arg0: i32) -> (i32, i32) {
    %c0_i32 = arith.constant 0 : i32
    %c0_i32_0 = arith.constant 0 : i32
    return %c0_i32, %arg0 : i32, i32
  }
}

</mosaic_0001>

<bundles_post_ra>
// kernel: tpu_custom_call.1
= control target key start
LH: loop header
LB: loop body
LE: loop exit
PB: predicated region body
PF: predicated region fallthrough
CT: control target
= control target key end

     0   :  { %s3391_s22 = smov 32   ;;  %vm125_vm0 = vcmask 261120   ;;  %v3392_v5 = vmov 0   ;;  %s4001_s0 = inlined_call_operand.vmem [shape: f32[32,32], index: 0, kind: input, shape index: {}]   ;;  %s4002_s1 = inlined_call_operand.vmem [shape: f32[32,32], index: 1, kind: input, shape index: {}]   ;;  %s4003_s2 = inlined_call_operand.vmem [shape: f32[224,32], index: 2, kind: input, shape index: {}]   ;;  %s4004_s3 = inlined_call_operand.vmem [shape: f32[32,64], index: 3, kind: input, shape index: {}]   ;;  %s4005_s4 = inlined_call_operand.vmem [shape: f32[384,1], index: 4, kind: input, shape index: {}]   ;;  %s4006_s5 = inlined_call_operand.hbm [shape: f32[32,32], index: 5, kind: output, shape index: {}]  }
   0x1   :  { %v108_v0 = vld [vmem:[%s4002_s1 + $0x18] sm:$0xff]  ;;  %v106_v1 = vld [vmem:[%s4002_s1 + $0x8] sm:$0xff]  ;;  %v107_v2 = vld [vmem:[%s4002_s1 + $0x10] sm:$0xff]  ;;  %3300 = vset.pattern.permute.xlu1 %v3392_v5  ;;  %3299 = vset.pattern.permute.xlu0 %v3392_v5 }
   0x2   :  { %119 = vrot.lane.b32.xlu0 %v108_v0, %s3391_s22  ;;  %115 = vrot.lane.b32.xlu1 %v106_v1, %s3391_s22  ;;  %v105_v3 = vld [vmem:[%s4002_s1] sm:$0xff]  ;;  %v54_v6 = vld [vmem:[%s4005_s4 + $0x8] sm:$0xff] }
   0x3   :  { %v21_v4 = vld [vmem:[%s4003_s2] sm:$0xff]  ;;  %v55_v8 = vld [vmem:[%s4005_s4 + $0x10] sm:$0xff]  ;;  %v56_v9 = vld [vmem:[%s4005_s4 + $0x18] sm:$0xff] }
   0x4   :  { %3104 = vmatprep.mubr.msk.f32.mxu0 %vm125_vm0, %v21_v4  ;;  %v53_v7 = vld [vmem:[%s4005_s4] sm:$0xff] }
   0x6   :  { %117 = vrot.lane.b32.xlu0 %v107_v2, %s3391_s22  ;;  %113 = vrot.lane.b32.xlu1 %v105_v3, %s3391_s22 }
   0xa   :  { %137 = vperm.xlu1 %3300, %v54_v6   ;;  %132 = vperm.xlu0 %3299, %v53_v7  }
   0xb   :  { %10 = vsyncpa [#allocation4], 0  ;;  %v96_v10 = vld [vmem:[%s4005_s4 + $0x158] sm:$0xff]  ;;  %v95_v11 = vld [vmem:[%s4005_s4 + $0x150] sm:$0xff]  ;;  %vm247_vm1 = vcmask 523264   ;;  %s3393_s16 = smov 96  }
   0xc   :  { %v100_v12 = vld [vmem:[%s4005_s4 + $0x178] sm:$0xff]  ;;  %v94_v13 = vld [vmem:[%s4005_s4 + $0x148] sm:$0xff]  ;;  %v99_v14 = vld [vmem:[%s4005_s4 + $0x170] sm:$0xff]  ;;  %s3394_s24 = smov 80   ;;  %vm596_vm2 = vcmask 64512   ;;  %s3395_s1 = smov 112  }
   0xd   :  { %v93_v15 = vld [vmem:[%s4005_s4 + $0x140] sm:$0xff]  ;;  %v98_v16 = vld [vmem:[%s4005_s4 + $0x168] sm:$0xff]  ;;  %v104_v22 = vld [vmem:[%s4001_s0 + $0x18] sm:$0xff]  ;;  %vm3397_vm3 = vmmov 0   ;;  %vm678_vm4 = vcmask 130048   ;;  %s3398_s12 = smov 16  }
   0xe   :  { %142 = vperm.xlu1 %3300, %v55_v8   ;;  %147 = vperm.xlu0 %3299, %v56_v9   ;;  %v97_v17 = vld [vmem:[%s4005_s4 + $0x160] sm:$0xff]  ;;  %v62_v20 = vld [vmem:[%s4005_s4 + $0x48] sm:$0xff]  ;;  %v103_v26 = vld [vmem:[%s4001_s0 + $0x10] sm:$0xff]  ;;  %vm1662_vm5 = vcmask 261248   ;;  %s3399_s10 = smov [#allocation3]  }
   0xf   :  { %v61_v18 = vld [vmem:[%s4005_s4 + $0x40] sm:$0xff]  ;;  %v102_v29 = vld [vmem:[%s4001_s0 + $0x8] sm:$0xff]  ;;  %v23_v35 = vld [vmem:[%s4003_s2 + $0x10] sm:$0xff]  ;;  %s2925_s11 = sshll.u32 %s3399_s10, 4  ;;  %s2926_s11 = int_to_ptr.vmem [resolvable:$true] %s2925_s11 }
  0x10   :  { %v57_v19 = vld [vmem:[%s4005_s4 + $0x20] sm:$0xff]  ;;  %v22_v34 = vld [vmem:[%s4003_s2 + $0x8] sm:$0xff]  ;;  %v24_v36 = vld [vmem:[%s4003_s2 + $0x18] sm:$0xff]  ;;  %p3374_p1 = scmp.lt.s32.totalorder %s2926_s11, %s2926_s11 }
  0x11   :  { %v65_v21 = vld [vmem:[%s4005_s4 + $0x60] sm:$0xff] }
  0x12   :  { %308 = vperm.xlu1 %3300, %v96_v10   ;;  %303 = vperm.xlu0 %3299, %v95_v11   ;;  %v101_v30 = vld [vmem:[%s4001_s0] sm:$0xff] }
  0x13   :  { %v25_v37 = vld [vmem:[%s4003_s2 + $0x20] sm:$0xff] }
  0x14   :  { %3118 = vmatprep.mubr.msk.f32.mxu1 %vm125_vm0, %v25_v37 }
  0x16   :  { %332 = vperm.xlu1 %3300, %v100_v12   ;;  %298 = vperm.xlu0 %3299, %v94_v13  }
  0x1a   :  { %327 = vperm.xlu1 %3300, %v99_v14   ;;  %293 = vperm.xlu0 %3299, %v93_v15  }
  0x1e   :  { %322 = vperm.xlu1 %3300, %v98_v16   ;;  %317 = vperm.xlu0 %3299, %v97_v17  }
  0x22   :  { %361 = vperm.xlu1 %3300, %v61_v18  }
  0x26   :  { %341 = vperm.xlu1 %3300, %v57_v19  }
  0x2a   :  { %366 = vperm.xlu1 %3300, %v62_v20  }
  0x2e   :  { %381 = vperm.xlu1 %3300, %v65_v21  }
  0x74   :  { %v120_v23 = vpop.permute.xlu0 %119  ;;  %v116_v24 = vpop.permute.xlu1 %115 }
  0x75   :  { %v129_v25 = vsel %vm125_vm0, %v104_v22, %v120_v23  ;;  %v127_v32 = vsel %vm125_vm0, %v102_v29, %v116_v24 }
  0x76   :  { %3096 = vmatprep.subr.mxu0 %v129_v25 }
  0x77   :  { %3097 = vmatpush3.msra.mxu0 %v129_v25 }
  0x78   :  { %v118_v27 = vpop.permute.xlu0 %117  ;;  %v114_v28 = vpop.permute.xlu1 %113 }
  0x79   :  { %v128_v31 = vsel %vm125_vm0, %v103_v26, %v118_v27  ;;  %v126_v33 = vsel %vm125_vm0, %v101_v30, %v114_v28 }
  0x7a   :  { %3098 = vmatprep.subr.mxu0 %v128_v31 }
  0x7b   :  { %3099 = vmatpush3.msra.mxu0 %v128_v31 }
  0x7c   :  { %3100 = vmatprep.subr.mxu0 %v127_v32 }
  0x7d   :  { %3101 = vmatpush3.msra.mxu0 %v127_v32 }
  0x7e   :  { %3102 = vmatprep.subr.mxu0 %v126_v33 }
  0x7f   :  { %3103 = vmatpush3.msra.mxu0 %v126_v33 }
  0x80   :  { %3105 = vmatmul.mubr.msk.f32.vlgmr.msra.gmra.mxu0 %vm125_vm0, %v22_v34 }
  0x81   :  { %3107 = vmatprep.mubr.msk.f32.mxu0 %vm125_vm0, %v23_v35 }
  0x84   :  { %3108 = vmatmul.mubr.msk.f32.gmra.mxu0 %vm125_vm0, %v24_v36 }
  0x85   :  { %v138_v38 = vpop.permute.xlu1 %137  ;;  %v133_v39 = vpop.permute.xlu0 %132 }
  0x89   :  { %v143_v45 = vpop.permute.xlu1 %142  ;;  %v148_v47 = vpop.permute.xlu0 %147 }
  0x8d   :  { %v309_v23 = vpop.permute.xlu1 %308  ;;  %v304_v24 = vpop.permute.xlu0 %303 }
  0x91   :  { %v333_v25 = vpop.permute.xlu1 %332  ;;  %v299_v26 = vpop.permute.xlu0 %298 }
  0x95   :  { %v328_v31 = vpop.permute.xlu1 %327  ;;  %v294_v35 = vpop.permute.xlu0 %293 }
 0x140   :  { %v3106_v40 = vpop.f32.mrf.mxu0 }
 0x141   :  { %v234_v42 = vadd.f32 %v3106_v40, %v138_v38  ;;  %v323_v40 = vpop.permute.xlu1 %322 }
 0x142   :  { %v228_v41 = vpop.f32.mrf.mxu0 }
 0x143   :  { %v229_v43 = vadd.f32 %v228_v41, %v133_v39  ;;  %v249_v49 = vsel %vm247_vm1, %v234_v42, 0.0 }
 0x144   :  { %v3109_v44 = vpop.f32.mrf.mxu0 }
 0x145   :  { %v248_v46 = vsel %vm247_vm1, %v229_v43, 0.0  ;;  %v244_v50 = vadd.f32 %v3109_v44, %v148_v47  ;;  %v26_v44 = vld [vmem:[%s4003_s2 + $0x28] sm:$0xff]  ;;  %v29_v47 = vld [vmem:[%s4003_s2 + $0x40] sm:$0xff] }
 0x146   :  { %v238_v48 = vpop.f32.mrf.mxu0  ;;  %v250_v52 = vadd.f32 %v249_v49, %v248_v46  ;;  %v28_v46 = vld [vmem:[%s4003_s2 + $0x38] sm:$0xff]  ;;  %v31_v49 = vld [vmem:[%s4003_s2 + $0x50] sm:$0xff] }
 0x147   :  { %v239_v51 = vadd.f32 %v238_v48, %v143_v45  ;;  %v253_v55 = vsel %vm247_vm1, %v244_v50, 0.0  ;;  %v27_v45 = vld [vmem:[%s4003_s2 + $0x30] sm:$0xff]  ;;  %v30_v48 = vld [vmem:[%s4003_s2 + $0x48] sm:$0xff] }
 0x149   :  { %v251_v53 = vsel %vm247_vm1, %v239_v51, 0.0 }
 0x14a   :  { %v252_v54 = vadd.f32 %v251_v53, %v250_v52  ;;  %v34_v52 = vld [vmem:[%s4003_s2 + $0x68] sm:$0xff]  ;;  %v362_v53 = vpop.permute.xlu1 %361 }
 0x14c   :  { %v254_v56 = vadd.f32 %v253_v55, %v252_v54 }
 0x14e   :  { %v255_v57 = vrot.slane %v254_v56, 4  ;;  %v342_v55 = vpop.permute.xlu1 %341 }
 0x150   :  { %v256_v58 = vadd.f32 %v255_v57, %v254_v56 }
 0x152   :  { %v257_v59 = vrot.slane %v256_v58, 2 }
 0x154   :  { %v258_v60 = vadd.f32 %v257_v59, %v256_v58 }
 0x156   :  { %v259_v61 = vrot.slane %v258_v60, 1 }
 0x158   :  { %v260_v62 = vadd.f32 %v259_v61, %v258_v60  ;;  %v367_v60 = vpop.permute.xlu1 %366 }
 0x15a   :  { %v262_v63 = vmul.f32 0.03125, %v260_v62 }
 0x15c   :  { %v263_v0 = vsub.f32 %v229_v43, %v262_v63  ;;  %v264_v1 = vsub.f32 %v234_v42, %v262_v63  ;;  %v265_v2 = vsub.f32 %v239_v51, %v262_v63  ;;  %v266_v3 = vsub.f32 %v244_v50, %v262_v63  ;;  %v318_v42 = vpop.permute.xlu0 %317  ;;  %v32_v50 = vld [vmem:[%s4003_s2 + $0x58] sm:$0xff]  ;;  %v33_v51 = vld [vmem:[%s4003_s2 + $0x60] sm:$0xff] }
 0x15e   :  { %v267_v4 = vmul.f32 %v263_v0, %v263_v0  ;;  %v268_v5 = vmul.f32 %v264_v1, %v264_v1  ;;  %v269_v6 = vmul.f32 %v265_v2, %v265_v2  ;;  %v270_v7 = vmul.f32 %v266_v3, %v266_v3 }
 0x160   :  { %v271_v8 = vsel %vm247_vm1, %v267_v4, 0.0  ;;  %v272_v9 = vsel %vm247_vm1, %v268_v5, 0.0  ;;  %v274_v11 = vsel %vm247_vm1, %v269_v6, 0.0  ;;  %v276_v13 = vsel %vm247_vm1, %v270_v7, 0.0  ;;  %v382_v5 = vpop.permute.xlu1 %381 }
 0x161   :  { %v273_v10 = vadd.f32 %v272_v9, %v271_v8  ;;  %v35_v8 = vld [vmem:[%s4003_s2 + $0x70] sm:$0xff]  ;;  %v36_v9 = vld [vmem:[%s4003_s2 + $0x78] sm:$0xff] }
 0x163   :  { %v275_v12 = vadd.f32 %v274_v11, %v273_v10 }
 0x165   :  { %v277_v14 = vadd.f32 %v276_v13, %v275_v12  ;;  %v64_v12 = vld [vmem:[%s4005_s4 + $0x58] sm:$0xff]  ;;  %v63_v13 = vld [vmem:[%s4005_s4 + $0x50] sm:$0xff] }
 0x167   :  { %v278_v15 = vrot.slane %v277_v14, 4 }
 0x169   :  { %v279_v16 = vadd.f32 %v278_v15, %v277_v14  ;;  %v66_v14 = vld [vmem:[%s4005_s4 + $0x68] sm:$0xff]  ;;  %v59_v15 = vld [vmem:[%s4005_s4 + $0x30] sm:$0xff] }
 0x16b   :  { %v280_v17 = vrot.slane %v279_v16, 2 }
 0x16d   :  { %v281_v18 = vadd.f32 %v280_v17, %v279_v16  ;;  %v60_v16 = vld [vmem:[%s4005_s4 + $0x38] sm:$0xff] }
 0x16f   :  { %v282_v19 = vrot.slane %v281_v18, 1 }
 0x171   :  { %v283_v20 = vadd.f32 %v282_v19, %v281_v18 }
 0x173   :  { %v284_v21 = vmul.f32 0.03125, %v283_v20 }
 0x175   :  { %v285_v22 = vadd.f32 1e-05, %v284_v21 }
 0x177   :  { %3301 = vrsqrt.f32 %v285_v22 }
 0x184   :  { %v3302_v27 = vpop.eup %3301 }
 0x185   :  { %v289_v28 = vmul.f32 %v3302_v27, %v265_v2  ;;  %v290_v29 = vmul.f32 %v3302_v27, %v266_v3  ;;  %v288_v30 = vmul.f32 %v3302_v27, %v264_v1  ;;  %v287_v34 = vmul.f32 %v3302_v27, %v263_v0  ;;  %v58_v2 = vld [vmem:[%s4005_s4 + $0x28] sm:$0xff] }
 0x187   :  { %v314_v32 = vmul.f32 %v309_v23, %v290_v29  ;;  %v313_v33 = vmul.f32 %v304_v24, %v289_v28  ;;  %v312_v37 = vmul.f32 %v299_v26, %v288_v30  ;;  %v311_v39 = vmul.f32 %v294_v35, %v287_v34 }
 0x188   :  { %v3396_v34 = vmov 0.0  }
 0x189   :  { %v3536_v36 = vadd.f32 %v333_v25, %v314_v32  ;;  %v3539_v38 = vadd.f32 %v328_v31, %v313_v33  ;;  %v3543_v41 = vadd.f32 %v323_v40, %v312_v37  ;;  %v3547_v43 = vadd.f32 %v318_v42, %v311_v39  ;;  %3141 = vmatprep.subr.mxu0 %v3396_v34 }
 0x18a   :  { %3145 = vmatprep.mubr.msk.f32.mxu0 %vm3397_vm3, %v3396_v34 }
 0x18b   :  { %3110 = vmatprep.subr.mxu1 %v3536_v36 }
 0x18c   :  { %3111 = vmatpush3.msra.mxu1 %v3536_v36 }
 0x18d   :  { %3112 = vmatprep.subr.mxu1 %v3539_v38 }
 0x18e   :  { %3113 = vmatpush3.msra.mxu1 %v3539_v38 }
 0x18f   :  { %3114 = vmatprep.subr.mxu1 %v3543_v41 }
 0x190   :  { %3115 = vmatpush3.msra.mxu1 %v3543_v41 }
 0x191   :  { %3116 = vmatprep.subr.mxu1 %v3547_v43 }
 0x192   :  { %3117 = vmatpush3.msra.mxu1 %v3547_v43 }
 0x193   :  { %3119 = vmatmul.mubr.msk.f32.vlgmr.msra.gmra.mxu1 %vm125_vm0, %v26_v44 }
 0x194   :  { %3121 = vmatprep.mubr.msk.f32.mxu1 %vm125_vm0, %v27_v45 }
 0x197   :  { %3122 = vmatmul.mubr.msk.f32.gmra.mxu1 %vm125_vm0, %v28_v46 }
 0x198   :  { %3124 = vmatprep.mubr.msk.f32.mxu1 %vm125_vm0, %v29_v47 }
 0x19b   :  { %3125 = vmatmul.mubr.msk.f32.gmra.mxu1 %vm125_vm0, %v30_v48 }
 0x19c   :  { %3127 = vmatprep.mubr.msk.f32.mxu1 %vm125_vm0, %v31_v49 }
 0x19f   :  { %3128 = vmatmul.mubr.msk.f32.gmra.mxu1 %vm125_vm0, %v32_v50 }
 0x1a0   :  { %3130 = vmatprep.mubr.msk.f32.mxu1 %vm125_vm0, %v33_v51 }
 0x1a3   :  { %3131 = vmatmul.mubr.msk.f32.gmra.mxu1 %vm125_vm0, %v34_v52 }
 0x1a4   :  { %3133 = vmatprep.mubr.msk.f32.mxu1 %vm125_vm0, %v35_v8 }
 0x1a7   :  { %3134 = vmatmul.mubr.msk.f32.gmra.mxu1 %vm125_vm0, %v36_v9 }
 0x253   :  { %v3588_v54 = vpop.f32.mrf.mxu1 }
 0x255   :  { %v501_v56 = vpop.f32.mrf.mxu1 }
 0x256   :  { %v502_v57 = vadd.f32 %v501_v56, %v342_v55 }
 0x257   :  { %v3590_v58 = vpop.f32.mrf.mxu1 }
 0x258   :  { %3136 = vmatprep.subr.mxu1 %v502_v57 }
 0x259   :  { %v511_v59 = vpop.f32.mrf.mxu1  ;;  %3137 = vmatpush3.msra.mxu1 %v502_v57 }
 0x25a   :  { %3165 = vmatprep.subr.mxu1 %v3396_v34 }
 0x25b   :  { %v3126_v61 = vpop.f32.mrf.mxu1 }
 0x25c   :  { %v527_v62 = vadd.f32 %v3126_v61, %v367_v60 }
 0x25d   :  { %v521_v63 = vpop.f32.mrf.mxu1 }
 0x25e   :  { %v522_v0 = vadd.f32 %v521_v63, %v362_v53  ;;  %782 = vrot.lane.b32.xlu1 %v527_v62, %s3393_s16  ;;  %v68_v63 = vld [vmem:[%s4005_s4 + $0x78] sm:$0xff] }
 0x25f   :  { %v3129_v1 = vpop.f32.mrf.mxu1 }
 0x260   :  { %561 = vrot.lane.b32.xlu0 %v522_v0, %s3393_s16 }
 0x261   :  { %v531_v3 = vpop.f32.mrf.mxu1 }
 0x262   :  { %346 = vperm.xlu1 %3300, %v58_v2  }
 0x263   :  { %v3132_v4 = vpop.f32.mrf.mxu1 }
 0x265   :  { %v541_v6 = vpop.f32.mrf.mxu1 }
 0x266   :  { %v3597_v7 = vadd.f32 %v541_v6, %v382_v5 }
 0x267   :  { %v3135_v45 = vpop.f32.mrf.mxu1 }
 0x268   :  { %704 = vrot.lane.b32.xlu1 %v3597_v7, %s3393_s16 }
 0x269   :  { %v551_v46 = vpop.f32.mrf.mxu1 }
 0x2d0   :  { %v783_v10 = vpop.permute.xlu1 %782 }
 0x2d1   :  { %785 = vxpose.xlu1.b32.start.end [1/1] (short) (narrow) %v783_v10, 16 }
 0x2d2   :  { %v562_v11 = vpop.permute.xlu0 %561 }
 0x2d3   :  { %564 = vxpose.xlu0.b32.start.end [1/1] (short) (narrow) %v562_v11, 16 }
 0x2dd   :  { %v347_v19 = vpop.permute.xlu1 %346 }
 0x2de   :  { %v507_v31 = vadd.f32 %v3588_v54, %v347_v19  ;;  %v67_v54 = vld [vmem:[%s4005_s4 + $0x70] sm:$0xff] }
 0x2e1   :  { %v3627_v20 = vpop.permute.xlu1 %704 }
 0x2f3   :  { %376 = vperm.xlu1 %3300, %v64_v12  }
 0x2f7   :  { %1664 = vrot.lane.b32.xlu1 %v527_v62, %s3394_s24 }
 0x300   :  { %371 = vperm.xlu0 %3299, %v63_v13  }
 0x304   :  { %386 = vperm.xlu0 %3299, %v66_v14  }
 0x308   :  { %351 = vperm.xlu0 %3299, %v59_v15  }
 0x30c   :  { %356 = vperm.xlu0 %3299, %v60_v16  }
 0x34d   :  { %v3629_v21 = vpop.trf.xlu1 }
 0x34f   :  { %v580_v17 = vpop.trf.xlu0 }
 0x350   :  { %3138 = vmatprep.mubr.msk.f32.mxu1 %vm596_vm2, %v580_v17 }
 0x351   :  { %v3631_v22 = vpop.trf.xlu1 }
 0x353   :  { %v581_v18 = vpop.trf.xlu0 }
 0x354   :  { %3139 = vmatmul.mubr.msk.f32.vlgmr.msra.gmra.mxu1 %vm596_vm2, %v581_v18 }
 0x355   :  { %3169 = vmatprep.mubr.msk.f32.mxu1 %vm3397_vm3, %v3396_v34 }
 0x36e   :  { %v377_v23 = vpop.permute.xlu1 %376 }
 0x36f   :  { %v537_v24 = vadd.f32 %v3129_v1, %v377_v23 }
 0x371   :  { %2114 = vrot.lane.b32.xlu1 %v537_v24, %s3394_s24 }
 0x372   :  { %v1665_v42 = vpop.permute.xlu1 %1664 }
 0x375   :  { %1474 = vrot.lane.b32.xlu1 %v502_v57, %s3395_s1 }
 0x37b   :  { %v372_v25 = vpop.permute.xlu0 %371 }
 0x37c   :  { %v532_v26 = vadd.f32 %v531_v3, %v372_v25 }
 0x37e   :  { %1001 = vrot.lane.b32.xlu0 %v532_v26, %s3393_s16 }
 0x37f   :  { %v387_v27 = vpop.permute.xlu0 %386 }
 0x380   :  { %v3641_v30 = vadd.f32 %v3132_v4, %v387_v27 }
 0x382   :  { %1220 = vrot.lane.b32.xlu0 %v537_v24, %s3393_s16 }
 0x383   :  { %v352_v28 = vpop.permute.xlu0 %351 }
 0x384   :  { %v3636_v29 = vadd.f32 %v511_v59, %v352_v28 }
 0x386   :  { %1438 = vrot.lane.b32.xlu0 %v522_v0, %s3394_s24  ;;  %1925 = vrot.lane.b32.xlu1 %v3636_v29, %s3395_s1 }
 0x387   :  { %v357_v32 = vpop.permute.xlu0 %356 }
 0x388   :  { %v3647_v33 = vadd.f32 %v3590_v58, %v357_v32 }
 0x38a   :  { %1889 = vrot.lane.b32.xlu0 %v532_v26, %s3394_s24 }
 0x38e   :  { %923 = vrot.lane.b32.xlu0 %v3641_v30, %s3393_s16 }
 0x392   :  { %1700 = vrot.lane.b32.xlu0 %v507_v31, %s3395_s1 }
 0x396   :  { %2150 = vrot.lane.b32.xlu0 %v3647_v33, %s3395_s1 }
 0x3e3   :  { %v2115_v44 = vpop.permute.xlu1 %2114 }
 0x3e7   :  { %v3682_v9 = vpop.permute.xlu1 %1474 }
 0x3f0   :  { %v1002_v35 = vpop.permute.xlu0 %1001 }
 0x3f1   :  { %1004 = vxpose.xlu1.b32.start.end [1/1] (short) (narrow) %v1002_v35, 16 }
 0x3f4   :  { %v1221_v37 = vpop.permute.xlu0 %1220 }
 0x3f5   :  { %1223 = vxpose.xlu0.b32.start.end [1/1] (short) (narrow) %v1221_v37, 16 }
 0x3f8   :  { %v1439_v39 = vpop.permute.xlu0 %1438  ;;  %v3686_v11 = vpop.permute.xlu1 %1925 }
 0x3fa   :  { %1441 = vxpose.xlu0.b32.start.end [1/1] (short) (narrow) %v1439_v39, 16 }
 0x3fc   :  { %v1890_v40 = vpop.permute.xlu0 %1889 }
 0x3fd   :  { %1892 = vxpose.xlu1.b32.start.end [1/1] (short) (narrow) %v1890_v40, 16 }
 0x3ff   :  { %1667 = vxpose.xlu0.b32.start.end [1/1] (short) (narrow) %v1665_v42, 16 }
 0x400   :  { %v3676_v5 = vpop.permute.xlu0 %923 }
 0x404   :  { %2117 = vxpose.xlu0.b32.start.end [1/1] (short) (narrow) %v2115_v44, 16  ;;  %v3678_v6 = vpop.permute.xlu0 %1700 }
 0x408   :  { %v3680_v8 = vpop.permute.xlu0 %2150 }
 0x414   :  { %v3140_v47 = vpop.f32.mrf.mxu1 }
 0x415   :  { %v680_v49 = vsel %vm678_vm4, %v3140_v47, -inf }
 0x416   :  { %v669_v48 = vpop.f32.mrf.mxu1 }
 0x417   :  { %v679_v50 = vsel %vm678_vm4, %v669_v48, -inf }
 0x418   :  { %v681_v51 = vmax.f32 %v679_v50, %v680_v49 }
 0x41a   :  { %v682_v52 = vrot.slane %v681_v51, 4 }
 0x41c   :  { %v683_v53 = vmax.f32 %v681_v51, %v682_v52 }
 0x41e   :  { %v684_v55 = vrot.slane %v683_v53, 2 }
 0x41f   :  { %391 = vperm.xlu1 %3300, %v67_v54  }
 0x420   :  { %v685_v56 = vmax.f32 %v683_v53, %v684_v55 }
 0x422   :  { %v686_v57 = vrot.slane %v685_v56, 1 }
 0x424   :  { %v687_v58 = vmax.f32 %v685_v56, %v686_v57 }
 0x426   :  { %v688_v59 = vsub.f32 %v669_v48, %v687_v58  ;;  %v689_v60 = vsub.f32 %v3140_v47, %v687_v58 }
 0x428   :  { %v690_v61 = vmul.f32 1.442695, %v688_v59  ;;  %v692_v62 = vmul.f32 1.442695, %v689_v60 }
 0x42a   :  { %3303 = vpow2.f32 %v690_v61 }
 0x42b   :  { %3305 = vpow2.f32 %v692_v62 }
 0x431   :  { %396 = vperm.xlu0 %3299, %v68_v63  }
 0x437   :  { %v3304_v0 = vpop.eup %3303 }
 0x438   :  { %v3306_v1 = vpop.eup %3305  ;;  %v694_v2 = vsel %vm678_vm4, %v3304_v0, 0.0 }
 0x439   :  { %v695_v3 = vsel %vm678_vm4, %v3306_v1, 0.0  ;;  %3142 = vmatpush3.msra.mxu0 %v3306_v1 }
 0x43a   :  { %v696_v4 = vadd.f32 %v695_v3, %v694_v2  ;;  %3143 = vmatprep.subr.mxu0 %v3396_v34 }
 0x43b   :  { %3144 = vmatpush3.msra.mxu0 %v3304_v0 }
 0x43c   :  { %3146 = vmatmul.mubr.msk.f32.vlgmr.msra.gmra.mxu0 %vm678_vm4, %v3627_v20  ;;  %3148 = vmatprep.subr.mxu0 %v507_v31  ;;  %v697_v27 = vrot.slane %v696_v4, 4 }
 0x43d   :  { %3149 = vmatpush3.msra.mxu0 %v507_v31  ;;  %3150 = vmatprep.mubr.msk.f32.mxu0 %vm596_vm2, %v3629_v21 }
 0x43e   :  { %3153 = vmatprep.subr.mxu0 %v3396_v34  ;;  %v698_v28 = vadd.f32 %v697_v27, %v696_v4 }
 0x440   :  { %3151 = vmatmul.mubr.msk.f32.vlgmr.msra.gmra.mxu0 %vm596_vm2, %v3631_v22  ;;  %v699_v31 = vrot.slane %v698_v28, 2 }
 0x441   :  { %3157 = vmatprep.mubr.msk.f32.mxu0 %vm3397_vm3, %v3396_v34 }
 0x442   :  { %v700_v32 = vadd.f32 %v699_v31, %v698_v28 }
 0x444   :  { %v701_v35 = vrot.slane %v700_v32, 1 }
 0x446   :  { %v702_v37 = vadd.f32 %v701_v35, %v700_v32 }
 0x448   :  { %3307 = vrcp.f32 %v702_v37 }
 0x455   :  { %v3308_v39 = vpop.eup %3307 }
 0x46d   :  { %v1020_v12 = vpop.trf.xlu1 }
 0x471   :  { %v3684_v10 = vpop.trf.xlu0  ;;  %v1021_v14 = vpop.trf.xlu1 }
 0x475   :  { %v3688_v13 = vpop.trf.xlu0 }
 0x479   :  { %v3690_v15 = vpop.trf.xlu0  ;;  %v3692_v16 = vpop.trf.xlu1 }
 0x47d   :  { %v3694_v17 = vpop.trf.xlu0  ;;  %v3696_v18 = vpop.trf.xlu1 }
 0x481   :  { %v3698_v19 = vpop.trf.xlu0 }
 0x485   :  { %v3700_v21 = vpop.trf.xlu0 }
 0x489   :  { %v3704_v23 = vpop.trf.xlu0 }
 0x48d   :  { %v3706_v24 = vpop.trf.xlu0 }
 0x49a   :  { %v392_v20 = vpop.permute.xlu1 %391 }
 0x49b   :  { %v552_v22 = vadd.f32 %v551_v46, %v392_v20 }
 0x49d   :  { %2033 = vrot.lane.b32.xlu0 %v552_v22, %s3394_s24  ;;  %1142 = vrot.lane.b32.xlu1 %v552_v22, %s3393_s16 }
 0x4ac   :  { %v397_v25 = vpop.permute.xlu0 %396 }
 0x4ad   :  { %v557_v26 = vadd.f32 %v3135_v45, %v397_v25 }
 0x4af   :  { %1361 = vrot.lane.b32.xlu1 %v557_v26, %s3393_s16 }
 0x4b3   :  { %1582 = vrot.lane.b32.xlu1 %v3597_v7, %s3394_s24 }
 0x4b7   :  { %1808 = vrot.lane.b32.xlu1 %v3641_v30, %s3394_s24 }
 0x4bb   :  { %2258 = vrot.lane.b32.xlu1 %v557_v26, %s3394_s24 }
 0x4fc   :  { %v774_v40 = vpop.f32.mrf.mxu0 }
 0x4fd   :  { %v779_v42 = vmul.f32 %v3308_v39, %v774_v40 }
 0x4fe   :  { %v3147_v44 = vpop.f32.mrf.mxu0 }
 0x4ff   :  { %780 = vst.msk [vmem:[#allocation2] sm:$0xff] %vm678_vm4, %v779_v42 }
 0x500   :  { %v3152_v45 = vpop.f32.mrf.mxu0 }
 0x501   :  { %v899_v46 = vsel %vm678_vm4, %v3152_v45, -inf }
 0x502   :  { %v889_v7 = vpop.f32.mrf.mxu0 }
 0x503   :  { %v898_v30 = vsel %vm678_vm4, %v889_v7, -inf }
 0x504   :  { %v900_v47 = vmax.f32 %v898_v30, %v899_v46 }
 0x506   :  { %v901_v48 = vrot.slane %v900_v47, 4 }
 0x508   :  { %v902_v49 = vmax.f32 %v900_v47, %v901_v48 }
 0x50a   :  { %v903_v50 = vrot.slane %v902_v49, 2 }
 0x50c   :  { %v904_v51 = vmax.f32 %v902_v49, %v903_v50 }
 0x50e   :  { %v905_v52 = vrot.slane %v904_v51, 1 }
 0x510   :  { %v906_v53 = vmax.f32 %v904_v51, %v905_v52 }
 0x512   :  { %v907_v54 = vsub.f32 %v889_v7, %v906_v53  ;;  %v908_v55 = vsub.f32 %v3152_v45, %v906_v53 }
 0x514   :  { %v909_v56 = vmul.f32 1.442695, %v907_v54  ;;  %v911_v57 = vmul.f32 1.442695, %v908_v55 }
 0x516   :  { %3309 = vpow2.f32 %v909_v56 }
 0x517   :  { %3311 = vpow2.f32 %v911_v57 }
 0x523   :  { %v3310_v58 = vpop.eup %3309 }
 0x524   :  { %v3312_v59 = vpop.eup %3311  ;;  %v913_v60 = vsel %vm678_vm4, %v3310_v58, 0.0 }
 0x525   :  { %v914_v61 = vsel %vm678_vm4, %v3312_v59, 0.0  ;;  %3154 = vmatpush3.msra.mxu0 %v3312_v59 }
 0x526   :  { %v915_v62 = vadd.f32 %v914_v61, %v913_v60  ;;  %3155 = vmatprep.subr.mxu0 %v3396_v34 }
 0x527   :  { %3156 = vmatpush3.msra.mxu0 %v3310_v58 }
 0x528   :  { %3158 = vmatmul.mubr.msk.f32.vlgmr.msra.gmra.mxu0 %vm678_vm4, %v3676_v5  ;;  %3160 = vmatprep.subr.mxu0 %v3636_v29 }
 0x529   :  { %3161 = vmatpush3.msra.mxu0 %v3636_v29  ;;  %3162 = vmatprep.mubr.msk.f32.mxu0 %vm596_vm2, %v1020_v12  ;;  %v916_v29 = vrot.slane %v915_v62, 4 }
 0x52a   :  { %3172 = vmatprep.subr.mxu0 %v3647_v33 }
 0x52c   :  { %3163 = vmatmul.mubr.msk.f32.vlgmr.msra.gmra.mxu0 %vm596_vm2, %v1021_v14 }
 0x52d   :  { %3173 = vmatpush3.msra.mxu0 %v3647_v33  ;;  %3174 = vmatprep.mubr.msk.f32.mxu0 %vm596_vm2, %v3684_v10  ;;  %v917_v33 = vadd.f32 %v916_v29, %v915_v62 }
 0x52e   :  { %3184 = vmatprep.subr.mxu0 %v3682_v9 }
 0x52f   :  { %v918_v63 = vrot.slane %v917_v33, 2 }
 0x530   :  { %3175 = vmatmul.mubr.msk.f32.vlgmr.msra.gmra.mxu0 %vm596_vm2, %v3688_v13 }
 0x531   :  { %3185 = vmatpush3.msra.mxu0 %v3682_v9  ;;  %3186 = vmatprep.mubr.msk.f32.mxu0 %vm596_vm2, %v3690_v15  ;;  %v919_v0 = vadd.f32 %v918_v63, %v917_v33 }
 0x532   :  { %3196 = vmatprep.subr.mxu0 %v3678_v6 }
 0x533   :  { %v920_v1 = vrot.slane %v919_v0, 1 }
 0x534   :  { %3187 = vmatmul.mubr.msk.f32.vlgmr.msra.gmra.mxu0 %vm596_vm2, %v3694_v17 }
 0x535   :  { %3197 = vmatpush3.msra.mxu0 %v3678_v6  ;;  %3198 = vmatprep.mubr.msk.f32.mxu0 %vm596_vm2, %v3698_v19  ;;  %v921_v2 = vadd.f32 %v920_v1, %v919_v0 }
 0x536   :  { %3208 = vmatprep.subr.mxu0 %v3686_v11 }
 0x537   :  { %3313 = vrcp.f32 %v921_v2 }
 0x538   :  { %3199 = vmatmul.mubr.msk.f32.vlgmr.msra.gmra.mxu0 %vm596_vm2, %v3700_v21 }
 0x539   :  { %3209 = vmatpush3.msra.mxu0 %v3686_v11  ;;  %3210 = vmatprep.mubr.msk.f32.mxu0 %vm596_vm2, %v3692_v16 }
 0x53a   :  { %3220 = vmatprep.subr.mxu0 %v3680_v8 }
 0x53c   :  { %3211 = vmatmul.mubr.msk.f32.vlgmr.msra.gmra.mxu0 %vm596_vm2, %v3696_v18 }
 0x53d   :  { %3221 = vmatpush3.msra.mxu0 %v3680_v8  ;;  %3222 = vmatprep.mubr.msk.f32.mxu0 %vm596_vm2, %v3704_v23 }
 0x540   :  { %3223 = vmatmul.mubr.msk.f32.vlgmr.msra.gmra.mxu0 %vm596_vm2, %v3706_v24 }
 0x544   :  { %v3314_v3 = vpop.eup %3313 }
 0x5e8   :  { %v993_v4 = vpop.f32.mrf.mxu0 }
 0x5e9   :  { %v998_v5 = vmul.f32 %v3314_v3, %v993_v4 }
 0x5ea   :  { %v3159_v6 = vpop.f32.mrf.mxu0 }
 0x5eb   :  { %999 = vst.msk [vmem:[#allocation2 + $0x8] sm:$0xff] %vm678_vm4, %v998_v5 }
 0x5ec   :  { %v3164_v8 = vpop.f32.mrf.mxu0 }
 0x5ed   :  { %v1118_v10 = vsel %vm678_vm4, %v3164_v8, -inf }
 0x5ee   :  { %v1108_v9 = vpop.f32.mrf.mxu0 }
 0x5ef   :  { %v1117_v11 = vsel %vm678_vm4, %v1108_v9, -inf }
 0x5f0   :  { %v1119_v12 = vmax.f32 %v1117_v11, %v1118_v10  ;;  %v3176_v13 = vpop.f32.mrf.mxu0 }
 0x5f1   :  { %v1337_v16 = vsel %vm678_vm4, %v3176_v13, -inf }
 0x5f2   :  { %v1120_v14 = vrot.slane %v1119_v12, 4  ;;  %v1327_v15 = vpop.f32.mrf.mxu0 }
 0x5f3   :  { %v1336_v17 = vsel %vm678_vm4, %v1327_v15, -inf }
 0x5f4   :  { %v1121_v18 = vmax.f32 %v1119_v12, %v1120_v14  ;;  %v1338_v19 = vmax.f32 %v1336_v17, %v1337_v16  ;;  %v3188_v20 = vpop.f32.mrf.mxu0 }
 0x5f5   :  { %v1559_v24 = vsel %vm678_vm4, %v3188_v20, -inf }
 0x5f6   :  { %v1122_v21 = vrot.slane %v1121_v18, 2  ;;  %v1339_v22 = vrot.slane %v1338_v19, 4  ;;  %v1549_v23 = vpop.f32.mrf.mxu0 }
 0x5f7   :  { %v1558_v25 = vsel %vm678_vm4, %v1549_v23, -inf }
 0x5f8   :  { %v1123_v26 = vmax.f32 %v1121_v18, %v1122_v21  ;;  %v1340_v27 = vmax.f32 %v1338_v19, %v1339_v22  ;;  %v1560_v28 = vmax.f32 %v1558_v25, %v1559_v24  ;;  %v3763_v31 = vpop.f32.mrf.mxu0 }
 0x5f9   :  { %v1785_v40 = vsel %vm678_vm4, %v3763_v31, -inf }
 0x5fa   :  { %v1124_v32 = vrot.slane %v1123_v26, 1  ;;  %v1341_v35 = vrot.slane %v1340_v27, 2  ;;  %v1561_v37 = vrot.slane %v1560_v28, 4  ;;  %v1775_v39 = vpop.f32.mrf.mxu0 }
 0x5fb   :  { %v1784_v42 = vsel %vm678_vm4, %v1775_v39, -inf }
 0x5fc   :  { %v1125_v44 = vmax.f32 %v1123_v26, %v1124_v32  ;;  %v1342_v45 = vmax.f32 %v1340_v27, %v1341_v35  ;;  %v1562_v7 = vmax.f32 %v1560_v28, %v1561_v37  ;;  %v1786_v46 = vmax.f32 %v1784_v42, %v1785_v40  ;;  %v3768_v30 = vpop.f32.mrf.mxu0 }
 0x5fd   :  { %v2010_v53 = vsel %vm678_vm4, %v3768_v30, -inf }
 0x5fe   :  { %v1126_v47 = vsub.f32 %v1108_v9, %v1125_v44  ;;  %v1127_v48 = vsub.f32 %v3164_v8, %v1125_v44  ;;  %v1343_v49 = vrot.slane %v1342_v45, 1  ;;  %v1563_v50 = vrot.slane %v1562_v7, 2  ;;  %v2000_v51 = vpop.f32.mrf.mxu0  ;;  %v1143_v44 = vpop.permute.xlu1 %1142 }
 0x5ff   :  { %v1787_v52 = vrot.slane %v1786_v46, 4  ;;  %v2009_v54 = vsel %vm678_vm4, %v2000_v51, -inf }
 0x600   :  { %v1128_v55 = vmul.f32 1.442695, %v1126_v47  ;;  %v1130_v56 = vmul.f32 1.442695, %v1127_v48  ;;  %v1344_v57 = vmax.f32 %v1342_v45, %v1343_v49  ;;  %v1564_v58 = vmax.f32 %v1562_v7, %v1563_v50  ;;  %v3773_v59 = vpop.f32.mrf.mxu0 }
 0x601   :  { %v1788_v60 = vmax.f32 %v1786_v46, %v1787_v52  ;;  %v2011_v61 = vmax.f32 %v2009_v54, %v2010_v53  ;;  %v2235_v62 = vsel %vm678_vm4, %v3773_v59, -inf }
 0x602   :  { %3315 = vpow2.f32 %v1128_v55  ;;  %v1345_v29 = vsub.f32 %v1327_v15, %v1344_v57  ;;  %v1346_v33 = vsub.f32 %v3176_v13, %v1344_v57  ;;  %v1565_v63 = vrot.slane %v1564_v58, 1  ;;  %v2225_v0 = vpop.f32.mrf.mxu0 }
 0x603   :  { %3317 = vpow2.f32 %v1130_v56  ;;  %v1789_v1 = vrot.slane %v1788_v60, 2  ;;  %v2012_v2 = vrot.slane %v2011_v61, 4  ;;  %v2234_v3 = vsel %vm678_vm4, %v2225_v0, -inf }
 0x604   :  { %v1347_v4 = vmul.f32 1.442695, %v1345_v29  ;;  %v1349_v5 = vmul.f32 1.442695, %v1346_v33  ;;  %v1566_v6 = vmax.f32 %v1564_v58, %v1565_v63  ;;  %v2236_v8 = vmax.f32 %v2234_v3, %v2235_v62 }
 0x605   :  { %v1790_v9 = vmax.f32 %v1788_v60, %v1789_v1  ;;  %v2013_v10 = vmax.f32 %v2011_v61, %v2012_v2 }
 0x606   :  { %3319 = vpow2.f32 %v1347_v4  ;;  %v1567_v11 = vsub.f32 %v1549_v23, %v1566_v6  ;;  %v1568_v12 = vsub.f32 %v3188_v20, %v1566_v6  ;;  %v2237_v14 = vrot.slane %v2236_v8, 4 }
 0x607   :  { %3321 = vpow2.f32 %v1349_v5  ;;  %v1791_v15 = vrot.slane %v1790_v9, 1  ;;  %v2014_v13 = vrot.slane %v2013_v10, 2 }
 0x608   :  { %v1569_v16 = vmul.f32 1.442695, %v1567_v11  ;;  %v1571_v17 = vmul.f32 1.442695, %v1568_v12  ;;  %v2238_v18 = vmax.f32 %v2236_v8, %v2237_v14  ;;  %v2034_v11 = vpop.permute.xlu0 %2033 }
 0x609   :  { %v1792_v19 = vmax.f32 %v1790_v9, %v1791_v15  ;;  %v2015_v21 = vmax.f32 %v2013_v10, %v2014_v13 }
 0x60a   :  { %3323 = vpow2.f32 %v1569_v16  ;;  %v2239_v22 = vrot.slane %v2238_v18, 2 }
 0x60b   :  { %3325 = vpow2.f32 %v1571_v17  ;;  %v1793_v24 = vsub.f32 %v1775_v39, %v1792_v19  ;;  %v1794_v25 = vsub.f32 %v3763_v31, %v1792_v19  ;;  %v2016_v26 = vrot.slane %v2015_v21, 1 }
 0x60c   :  { %v2240_v27 = vmax.f32 %v2238_v18, %v2239_v22 }
 0x60d   :  { %v1795_v28 = vmul.f32 1.442695, %v1793_v24  ;;  %v1797_v23 = vmul.f32 1.442695, %v1794_v25  ;;  %v2017_v20 = vmax.f32 %v2015_v21, %v2016_v26 }
 0x60e   :  { %v2241_v32 = vrot.slane %v2240_v27, 1 }
 0x60f   :  { %v3316_v35 = vpop.eup %3315  ;;  %3327 = vpow2.f32 %v1795_v28  ;;  %v2018_v37 = vsub.f32 %v2000_v51, %v2017_v20  ;;  %v2019_v40 = vsub.f32 %v3768_v30, %v2017_v20  ;;  %v1362_v51 = vpop.permute.xlu1 %1361 }
 0x610   :  { %v3318_v42 = vpop.eup %3317  ;;  %v1132_v45 = vsel %vm678_vm4, %v3316_v35, 0.0  ;;  %3329 = vpow2.f32 %v1797_v23  ;;  %v2242_v7 = vmax.f32 %v2240_v27, %v2241_v32 }
 0x611   :  { %v1133_v39 = vsel %vm678_vm4, %v3318_v42, 0.0  ;;  %v2020_v31 = vmul.f32 1.442695, %v2018_v37  ;;  %v2022_v46 = vmul.f32 1.442695, %v2019_v40  ;;  %3166 = vmatpush3.msra.mxu1 %v3318_v42 }
 0x612   :  { %v3782_v47 = vadd.f32 %v1133_v39, %v1132_v45  ;;  %v2243_v48 = vsub.f32 %v2225_v0, %v2242_v7  ;;  %v2244_v49 = vsub.f32 %v3773_v59, %v2242_v7  ;;  %3167 = vmatprep.subr.mxu1 %v3396_v34 }
 0x613   :  { %v3320_v50 = vpop.eup %3319  ;;  %3331 = vpow2.f32 %v2020_v31  ;;  %3168 = vmatpush3.msra.mxu1 %v3316_v35  ;;  %v1583_v61 = vpop.permute.xlu1 %1582 }
 0x614   :  { %v3322_v30 = vpop.eup %3321  ;;  %v1351_v52 = vsel %vm678_vm4, %v3320_v50, 0.0  ;;  %3333 = vpow2.f32 %v2022_v46  ;;  %v2245_v53 = vmul.f32 1.442695, %v2243_v48  ;;  %3170 = vmatmul.mubr.msk.f32.vlgmr.msra.gmra.mxu1 %vm678_vm4, %v1143_v44  ;;  %3177 = vmatprep.subr.mxu1 %v3396_v34  ;;  %v2247_v55 = vmul.f32 1.442695, %v2244_v49 }
 0x615   :  { %v1352_v54 = vsel %vm678_vm4, %v3322_v30, 0.0  ;;  %3178 = vmatpush3.msra.mxu1 %v3322_v30  ;;  %3181 = vmatprep.mubr.msk.f32.mxu1 %vm3397_vm3, %v3396_v34  ;;  %v1135_v16 = vrot.slane %v3782_v47, 4 }
 0x616   :  { %v1353_v56 = vadd.f32 %v1352_v54, %v1351_v52  ;;  %3335 = vpow2.f32 %v2245_v53  ;;  %3179 = vmatprep.subr.mxu1 %v3396_v34 }
 0x617   :  { %v3324_v57 = vpop.eup %3323  ;;  %3337 = vpow2.f32 %v2247_v55  ;;  %3180 = vmatpush3.msra.mxu1 %v3320_v50  ;;  %v1809_v3 = vpop.permute.xlu1 %1808  ;;  %v1136_v18 = vadd.f32 %v1135_v16, %v3782_v47  ;;  %v69_v16 = vld [vmem:[%s4005_s4 + $0x80] sm:$0xff] }
 0x618   :  { %v3326_v58 = vpop.eup %3325  ;;  %v1573_v59 = vsel %vm678_vm4, %v3324_v57, 0.0  ;;  %3182 = vmatmul.mubr.msk.f32.vlgmr.msra.gmra.mxu1 %vm678_vm4, %v1362_v51  ;;  %3189 = vmatprep.subr.mxu1 %v3396_v34  ;;  %v1354_v17 = vrot.slane %v1353_v56, 4 }
 0x619   :  { %v1574_v60 = vsel %vm678_vm4, %v3326_v58, 0.0  ;;  %3190 = vmatpush3.msra.mxu1 %v3326_v58  ;;  %3193 = vmatprep.mubr.msk.f32.mxu1 %vm3397_vm3, %v3396_v34  ;;  %v1137_v19 = vrot.slane %v1136_v18, 2 }
 0x61a   :  { %v1575_v62 = vadd.f32 %v1574_v60, %v1573_v59  ;;  %3191 = vmatprep.subr.mxu1 %v3396_v34  ;;  %v1355_v21 = vadd.f32 %v1354_v17, %v1353_v56  ;;  %v70_v17 = vld [vmem:[%s4005_s4 + $0x88] sm:$0xff] }
 0x61b   :  { %3192 = vmatpush3.msra.mxu1 %v3324_v57  ;;  %v2259_v13 = vpop.permute.xlu1 %2258  ;;  %v1138_v22 = vadd.f32 %v1137_v19, %v1136_v18  ;;  %v71_v18 = vld [vmem:[%s4005_s4 + $0x90] sm:$0xff]  ;;  %v72_v19 = vld [vmem:[%s4005_s4 + $0x98] sm:$0xff] }
 0x61c   :  { %v3328_v29 = vpop.eup %3327  ;;  %3194 = vmatmul.mubr.msk.f32.vlgmr.msra.gmra.mxu1 %vm678_vm4, %v1583_v61  ;;  %3201 = vmatprep.subr.mxu1 %v3396_v34  ;;  %v1356_v24 = vrot.slane %v1355_v21, 2  ;;  %v1576_v20 = vrot.slane %v1575_v62, 4 }
 0x61d   :  { %v3330_v33 = vpop.eup %3329  ;;  %v1799_v63 = vsel %vm678_vm4, %v3328_v29, 0.0  ;;  %3205 = vmatprep.mubr.msk.f32.mxu1 %vm3397_vm3, %v3396_v34  ;;  %v1139_v26 = vrot.slane %v1138_v22, 1 }
 0x61e   :  { %v1800_v0 = vsel %vm678_vm4, %v3330_v33, 0.0  ;;  %3202 = vmatpush3.msra.mxu1 %v3330_v33  ;;  %v1357_v27 = vadd.f32 %v1356_v24, %v1355_v21  ;;  %v1577_v44 = vadd.f32 %v1576_v20, %v1575_v62  ;;  %v88_v21 = vld [vmem:[%s4005_s4 + $0x118] sm:$0xff]  ;;  %v85_v20 = vld [vmem:[%s4005_s4 + $0x100] sm:$0xff] }
 0x61f   :  { %v1801_v1 = vadd.f32 %v1800_v0, %v1799_v63  ;;  %3203 = vmatprep.subr.mxu1 %v3396_v34  ;;  %v92_v24 = vld [vmem:[%s4005_s4 + $0x138] sm:$0xff] }
 0x620   :  { %v3332_v2 = vpop.eup %3331  ;;  %3204 = vmatpush3.msra.mxu1 %v3328_v29  ;;  %v1358_v32 = vrot.slane %v1357_v27, 1  ;;  %v1578_v31 = vrot.slane %v1577_v44, 2 }
 0x621   :  { %v3334_v4 = vpop.eup %3333  ;;  %v2024_v5 = vsel %vm678_vm4, %v3332_v2, 0.0  ;;  %3206 = vmatmul.mubr.msk.f32.vlgmr.msra.gmra.mxu1 %vm678_vm4, %v1809_v3  ;;  %3213 = vmatprep.subr.mxu1 %v3396_v34  ;;  %v1802_v25 = vrot.slane %v1801_v1, 4 }
 0x622   :  { %v2025_v6 = vsel %vm678_vm4, %v3334_v4, 0.0  ;;  %3214 = vmatpush3.msra.mxu1 %v3334_v4  ;;  %3217 = vmatprep.mubr.msk.f32.mxu1 %vm3397_vm3, %v3396_v34  ;;  %v1359_v42 = vadd.f32 %v1358_v32, %v1357_v27  ;;  %v1579_v49 = vadd.f32 %v1578_v31, %v1577_v44  ;;  %v38_v27 = vld [vmem:[%s4003_s2 + $0x88] sm:$0xff]  ;;  %v89_v32 = vld [vmem:[%s4005_s4 + $0x120] sm:$0xff]  ;;  %v76_v44 = vld [vmem:[%s4005_s4 + $0xb8] sm:$0xff] }
 0x623   :  { %v3336_v8 = vpop.eup %3335  ;;  %v2026_v9 = vadd.f32 %v2025_v6, %v2024_v5  ;;  %3215 = vmatprep.subr.mxu1 %v3396_v34  ;;  %v1803_v23 = vadd.f32 %v1802_v25, %v1801_v1  ;;  %v37_v25 = vld [vmem:[%s4003_s2 + $0x80] sm:$0xff] }
 0x624   :  { %v3338_v10 = vpop.eup %3337  ;;  %v2249_v12 = vsel %vm678_vm4, %v3336_v8, 0.0  ;;  %3216 = vmatpush3.msra.mxu1 %v3332_v2  ;;  %v1580_v52 = vrot.slane %v1579_v49, 1  ;;  %v81_v31 = vld [vmem:[%s4005_s4 + $0xe0] sm:$0xff] }
 0x625   :  { %v2250_v14 = vsel %vm678_vm4, %v3338_v10, 0.0  ;;  %3218 = vmatmul.mubr.msk.f32.vlgmr.msra.gmra.mxu1 %vm678_vm4, %v2034_v11  ;;  %3225 = vmatprep.subr.mxu1 %v3396_v34  ;;  %v2027_v28 = vrot.slane %v2026_v9, 4  ;;  %v1804_v37 = vrot.slane %v1803_v23, 2 }
 0x626   :  { %v2251_v15 = vadd.f32 %v2250_v14, %v2249_v12  ;;  %3226 = vmatpush3.msra.mxu1 %v3338_v10  ;;  %3229 = vmatprep.mubr.msk.f32.mxu1 %vm3397_vm3, %v3396_v34  ;;  %v1581_v59 = vadd.f32 %v1580_v52, %v1579_v49  ;;  %v84_v49 = vld [vmem:[%s4005_s4 + $0xf8] sm:$0xff] }
 0x627   :  { %3227 = vmatprep.subr.mxu1 %v3396_v34  ;;  %v1140_v34 = vadd.f32 %v1139_v26, %v1138_v22  ;;  %v2028_v40 = vadd.f32 %v2027_v28, %v2026_v9  ;;  %v1805_v45 = vadd.f32 %v1804_v37, %v1803_v23  ;;  %v87_v22 = vld [vmem:[%s4005_s4 + $0x110] sm:$0xff]  ;;  %v86_v26 = vld [vmem:[%s4005_s4 + $0x108] sm:$0xff] }
 0x628   :  { %3228 = vmatpush3.msra.mxu1 %v3336_v8  ;;  %v2252_v35 = vrot.slane %v2251_v15, 4  ;;  %v91_v28 = vld [vmem:[%s4005_s4 + $0x130] sm:$0xff] }
 0x629   :  { %3230 = vmatmul.mubr.msk.f32.vlgmr.msra.gmra.mxu1 %vm678_vm4, %v2259_v13  ;;  %3339 = vrcp.f32 %v1140_v34  ;;  %v2029_v7 = vrot.slane %v2028_v40, 2  ;;  %v1806_v46 = vrot.slane %v1805_v45, 1  ;;  %v39_v23 = vld [vmem:[%s4003_s2 + $0x90] sm:$0xff]  ;;  %v40_v34 = vld [vmem:[%s4003_s2 + $0x98] sm:$0xff] }
 0x62a   :  { %v2253_v39 = vadd.f32 %v2252_v35, %v2251_v15  ;;  %3341 = vrcp.f32 %v1359_v42  ;;  %v80_v35 = vld [vmem:[%s4005_s4 + $0xd8] sm:$0xff]  ;;  %v79_v37 = vld [vmem:[%s4005_s4 + $0xd0] sm:$0xff]  ;;  %v77_v42 = vld [vmem:[%s4005_s4 + $0xc0] sm:$0xff] }
 0x62b   :  { %v2030_v47 = vadd.f32 %v2029_v7, %v2028_v40  ;;  %v1807_v50 = vadd.f32 %v1806_v46, %v1805_v45  ;;  %v78_v40 = vld [vmem:[%s4005_s4 + $0xc8] sm:$0xff]  ;;  %v75_v45 = vld [vmem:[%s4005_s4 + $0xb0] sm:$0xff] }
 0x62c   :  { %v2254_v48 = vrot.slane %v2253_v39, 2  ;;  %v74_v7 = vld [vmem:[%s4005_s4 + $0xa8] sm:$0xff] }
 0x62d   :  { %v2031_v30 = vrot.slane %v2030_v47, 1  ;;  %3343 = vrcp.f32 %v1807_v50  ;;  %v90_v46 = vld [vmem:[%s4005_s4 + $0x128] sm:$0xff] }
 0x62e   :  { %v2255_v51 = vadd.f32 %v2254_v48, %v2253_v39  ;;  %v73_v39 = vld [vmem:[%s4005_s4 + $0xa0] sm:$0xff]  ;;  %v83_v48 = vld [vmem:[%s4005_s4 + $0xf0] sm:$0xff] }
 0x62f   :  { %v2032_v55 = vadd.f32 %v2031_v30, %v2030_v47  ;;  %v82_v47 = vld [vmem:[%s4005_s4 + $0xe8] sm:$0xff] }
 0x630   :  { %v2256_v56 = vrot.slane %v2255_v51, 1 }
 0x631   :  { %3345 = vrcp.f32 %v2032_v55 }
 0x632   :  { %v2257_v62 = vadd.f32 %v2256_v56, %v2255_v51  ;;  %3347 = vrcp.f32 %v1581_v59 }
 0x634   :  { %3349 = vrcp.f32 %v2257_v62 }
 0x636   :  { %v3340_v53 = vpop.eup %3339 }
 0x637   :  { %v3342_v60 = vpop.eup %3341 }
 0x63a   :  { %v3344_v1 = vpop.eup %3343 }
 0x63e   :  { %v3346_v5 = vpop.eup %3345 }
 0x63f   :  { %v3348_v10 = vpop.eup %3347 }
 0x641   :  { %v3350_v11 = vpop.eup %3349 }
 0x6d4   :  { %v1212_v54 = vpop.f32.mrf.mxu1 }
 0x6d5   :  { %v1217_v57 = vmul.f32 %v3340_v53, %v1212_v54 }
 0x6d6   :  { %v3171_v58 = vpop.f32.mrf.mxu1 }
 0x6d7   :  { %1218 = vst.msk [vmem:[#allocation2 + $0x10] sm:$0xff] %vm678_vm4, %v1217_v57 }
 0x6d8   :  { %v1431_v61 = vpop.f32.mrf.mxu1 }
 0x6d9   :  { %v1436_v29 = vmul.f32 %v3342_v60, %v1431_v61  ;;  %v41_v61 = vld [vmem:[%s4003_s2 + $0xa0] sm:$0xff] }
 0x6da   :  { %v3183_v33 = vpop.f32.mrf.mxu1  ;;  %3254 = vmatprep.mubr.msk.f32.mxu1 %vm125_vm0, %v41_v61 }
 0x6db   :  { %1437 = vst.msk [vmem:[#allocation2 + $0x18] sm:$0xff] %vm678_vm4, %v1436_v29 }
 0x6dc   :  { %v1652_v63 = vpop.f32.mrf.mxu1 }
 0x6dd   :  { %v1657_v14 = vmul.f32 %v3348_v10, %v1652_v63 }
 0x6de   :  { %v3195_v0 = vpop.f32.mrf.mxu1 }
 0x6e1   :  { %v1878_v2 = vpop.f32.mrf.mxu1 }
 0x6e2   :  { %v1883_v3 = vmul.f32 %v3344_v1, %v1878_v2 }
 0x6e3   :  { %v3207_v4 = vpop.f32.mrf.mxu1 }
 0x6e4   :  { %1885 = vrot.lane.b32.xlu0 %v1883_v3, %s3398_s12 }
 0x6e5   :  { %v2103_v6 = vpop.f32.mrf.mxu1 }
 0x6e6   :  { %v2108_v8 = vmul.f32 %v3346_v5, %v2103_v6 }
 0x6e7   :  { %v3219_v9 = vpop.f32.mrf.mxu1 }
 0x6e8   :  { %2110 = vrot.lane.b32.xlu1 %v2108_v8, %s3398_s12 }
 0x6e9   :  { %v2328_v12 = vpop.f32.mrf.mxu1 }
 0x6ea   :  { %v2333_v15 = vmul.f32 %v3350_v11, %v2328_v12 }
 0x6eb   :  { %v3231_v13 = vpop.f32.mrf.mxu1 }
 0x6ec   :  { %1659 = vrot.lane.b32.xlu1 %v1657_v14, %s3398_s12  ;;  %2335 = vrot.lane.b32.xlu0 %v2333_v15, %s3398_s12 }
 0x6f0   :  { %2345 = vperm.xlu1 %3300, %v69_v16  }
 0x6f4   :  { %2350 = vperm.xlu1 %3300, %v70_v17  }
 0x6f8   :  { %2355 = vperm.xlu1 %3300, %v71_v18  }
 0x6fc   :  { %2360 = vperm.xlu1 %3300, %v72_v19  }
 0x700   :  { %2555 = vperm.xlu1 %3300, %v88_v21  }
 0x704   :  { %2550 = vperm.xlu1 %3300, %v87_v22  }
 0x708   :  { %2579 = vperm.xlu1 %3300, %v92_v24  }
 0x70a   :  { %2363 = vxpose.xlu0.b32.start [1/4] (short) (narrow) %v37_v25, 32 }
 0x70c   :  { %2545 = vperm.xlu1 %3300, %v86_v26  }
 0x70e   :  { %2364 = vxpose.xlu0.b32.cont [2/4] (short) (narrow) %v38_v27, 32 }
 0x710   :  { %2574 = vperm.xlu1 %3300, %v91_v28  }
 0x712   :  { %2365 = vxpose.xlu0.b32.cont [3/4] (short) (narrow) %v39_v23, 32 }
 0x714   :  { %2540 = vperm.xlu1 %3300, %v85_v20  }
 0x716   :  { %2366 = vxpose.xlu0.b32.end [4/4] (short) (narrow) %v40_v34, 32 }
 0x718   :  { %2564 = vperm.xlu1 %3300, %v89_v32  }
 0x71c   :  { %2623 = vperm.xlu1 %3300, %v80_v35  }
 0x720   :  { %2618 = vperm.xlu1 %3300, %v79_v37  }
 0x724   :  { %2613 = vperm.xlu1 %3300, %v78_v40  }
 0x728   :  { %2608 = vperm.xlu1 %3300, %v77_v42  }
 0x72c   :  { %2603 = vperm.xlu1 %3300, %v76_v44  }
 0x730   :  { %2598 = vperm.xlu1 %3300, %v75_v45  }
 0x734   :  { %2593 = vperm.xlu1 %3300, %v74_v7  }
 0x738   :  { %2588 = vperm.xlu1 %3300, %v73_v39  }
 0x73c   :  { %2797 = vperm.xlu1 %3300, %v81_v31  }
 0x73f   :  { %2569 = vperm.xlu0 %3299, %v90_v46  }
 0x740   :  { %2802 = vperm.xlu1 %3300, %v82_v47  }
 0x743   :  { %2807 = vperm.xlu0 %3299, %v83_v48  }
 0x744   :  { %2812 = vperm.xlu1 %3300, %v84_v49  }
 0x756   :  { %v1886_v50 = vpop.permute.xlu0 %1885 }
 0x757   :  { %1888 = vst.msk [vmem:[#allocation2 + $0x8] sm:$0xff] %vm1662_vm5, %v1886_v50 }
 0x75a   :  { %v2111_v30 = vpop.permute.xlu1 %2110 }
 0x75b   :  { %2113 = vst.msk [vmem:[#allocation2 + $0x10] sm:$0xff] %vm1662_vm5, %v2111_v30 }
 0x75e   :  { %v1660_v51 = vpop.permute.xlu1 %1659  ;;  %v2336_v52 = vpop.permute.xlu0 %2335  ;;  %v2340_v55 = vld [vmem:[#allocation2 + $0x8] sm:$0xff] }
 0x75f   :  { %1663 = vst.msk [vmem:[#allocation2] sm:$0xff] %vm1662_vm5, %v1660_v51  ;;  %2338 = vst.msk [vmem:[#allocation2 + $0x18] sm:$0xff] %vm1662_vm5, %v2336_v52 }
 0x762   :  { %v2341_v54 = vld [vmem:[#allocation2 + $0x10] sm:$0xff] }
 0x766   :  { %v2342_v53 = vld [vmem:[#allocation2 + $0x18] sm:$0xff]  ;;  %v2339_v56 = vld [vmem:[#allocation2] sm:$0xff] }
 0x767   :  { %3232 = vmatprep.subr.mxu0 %v2342_v53 }
 0x768   :  { %3233 = vmatpush3.msra.mxu0 %v2342_v53 }
 0x769   :  { %3234 = vmatprep.subr.mxu0 %v2341_v54 }
 0x76a   :  { %3235 = vmatpush3.msra.mxu0 %v2341_v54 }
 0x76b   :  { %3236 = vmatprep.subr.mxu0 %v2340_v55  ;;  %v2346_v62 = vpop.permute.xlu1 %2345 }
 0x76c   :  { %3237 = vmatpush3.msra.mxu0 %v2340_v55 }
 0x76d   :  { %3238 = vmatprep.subr.mxu0 %v2339_v56 }
 0x76e   :  { %3239 = vmatpush3.msra.mxu0 %v2339_v56 }
 0x76f   :  { %v2351_v29 = vpop.permute.xlu1 %2350 }
 0x773   :  { %v2356_v63 = vpop.permute.xlu1 %2355 }
 0x777   :  { %v2361_v4 = vpop.permute.xlu1 %2360 }
 0x77b   :  { %v2556_v46 = vpop.permute.xlu1 %2555 }
 0x77f   :  { %v2551_v50 = vpop.permute.xlu1 %2550 }
 0x783   :  { %v2580_v53 = vpop.permute.xlu1 %2579 }
 0x786   :  { %v2379_v57 = vpop.trf.xlu0 }
 0x787   :  { %3240 = vmatprep.mubr.msk.f32.mxu0 %vm125_vm0, %v2379_v57  ;;  %v2546_v54 = vpop.permute.xlu1 %2545 }
 0x78a   :  { %v2380_v58 = vpop.trf.xlu0 }
 0x78b   :  { %3241 = vmatmul.mubr.msk.f32.vlgmr.msra.gmra.mxu0 %vm125_vm0, %v2380_v58  ;;  %v2575_v55 = vpop.permute.xlu1 %2574 }
 0x78e   :  { %v2381_v59 = vpop.trf.xlu0 }
 0x78f   :  { %3243 = vmatprep.mubr.msk.f32.mxu0 %vm125_vm0, %v2381_v59 }
 0x792   :  { %v2382_v60 = vpop.trf.xlu0 }
 0x793   :  { %3244 = vmatmul.mubr.msk.f32.gmra.mxu0 %vm125_vm0, %v2382_v60 }
 0x84b   :  { %v3242_v33 = vpop.f32.mrf.mxu0 }
 0x84c   :  { %v2479_v2 = vadd.f32 %v3242_v33, %v2351_v29  ;;  %v2541_v29 = vpop.permute.xlu1 %2540 }
 0x84d   :  { %v2473_v0 = vpop.f32.mrf.mxu0 }
 0x84e   :  { %v2474_v1 = vadd.f32 %v2473_v0, %v2346_v62  ;;  %v2493_v6 = vadd.f32 %v2479_v2, %v3543_v41  ;;  %v2570_v2 = vpop.permute.xlu0 %2569 }
 0x850   :  { %v2492_v3 = vadd.f32 %v2474_v1, %v3547_v43  ;;  %v2497_v12 = vsel %vm125_vm0, %v2493_v6, 0.0 }
 0x852   :  { %v2496_v10 = vsel %vm125_vm0, %v2492_v3, 0.0 }
 0x853   :  { %v3245_v5 = vpop.f32.mrf.mxu0  ;;  %v2498_v13 = vadd.f32 %v2497_v12, %v2496_v10  ;;  %v45_v10 = vld [vmem:[%s4003_s2 + $0xc0] sm:$0xff]  ;;  %v47_v12 = vld [vmem:[%s4003_s2 + $0xd0] sm:$0xff] }
 0x854   :  { %v2489_v8 = vadd.f32 %v3245_v5, %v2361_v4  ;;  %v2565_v4 = vpop.permute.xlu1 %2564 }
 0x855   :  { %v2483_v9 = vpop.f32.mrf.mxu0 }
 0x856   :  { %v2484_v11 = vadd.f32 %v2483_v9, %v2356_v63  ;;  %v2495_v14 = vadd.f32 %v2489_v8, %v3536_v36  ;;  %v43_v8 = vld [vmem:[%s4003_s2 + $0xb0] sm:$0xff]  ;;  %v44_v9 = vld [vmem:[%s4003_s2 + $0xb8] sm:$0xff] }
 0x858   :  { %v2494_v15 = vadd.f32 %v2484_v11, %v3539_v38  ;;  %v2501_v43 = vsel %vm125_vm0, %v2495_v14, 0.0  ;;  %v46_v11 = vld [vmem:[%s4003_s2 + $0xc8] sm:$0xff] }
 0x85a   :  { %v2499_v16 = vsel %vm125_vm0, %v2494_v15, 0.0 }
 0x85b   :  { %v2500_v17 = vadd.f32 %v2499_v16, %v2498_v13  ;;  %v2624_v13 = vpop.permute.xlu1 %2623 }
 0x85d   :  { %v2502_v18 = vadd.f32 %v2501_v43, %v2500_v17 }
 0x85f   :  { %v2503_v19 = vrot.slane %v2502_v18, 4  ;;  %v2619_v16 = vpop.permute.xlu1 %2618 }
 0x861   :  { %v2504_v41 = vadd.f32 %v2503_v19, %v2502_v18 }
 0x863   :  { %v2505_v21 = vrot.slane %v2504_v41, 2  ;;  %v2614_v17 = vpop.permute.xlu1 %2613 }
 0x865   :  { %v2506_v22 = vadd.f32 %v2505_v21, %v2504_v41 }
 0x867   :  { %v2507_v24 = vrot.slane %v2506_v22, 1  ;;  %v2609_v43 = vpop.permute.xlu1 %2608 }
 0x869   :  { %v2508_v25 = vadd.f32 %v2507_v24, %v2506_v22 }
 0x86b   :  { %v2509_v26 = vmul.f32 0.03125, %v2508_v25  ;;  %v2604_v18 = vpop.permute.xlu1 %2603 }
 0x86d   :  { %v2510_v27 = vsub.f32 %v2492_v3, %v2509_v26  ;;  %v2511_v28 = vsub.f32 %v2493_v6, %v2509_v26  ;;  %v2512_v23 = vsub.f32 %v2494_v15, %v2509_v26  ;;  %v2513_v36 = vsub.f32 %v2495_v14, %v2509_v26  ;;  %v42_v6 = vld [vmem:[%s4003_s2 + $0xa8] sm:$0xff]  ;;  %v48_v14 = vld [vmem:[%s4003_s2 + $0xd8] sm:$0xff]  ;;  %v49_v15 = vld [vmem:[%s4004_s3] sm:$0xff] }
 0x86e   :  { %3282 = vmatprep.mubr.msk.f32.mxu0 %vm247_vm1, %v49_v15 }
 0x86f   :  { %v2514_v20 = vmul.f32 %v2510_v27, %v2510_v27  ;;  %v2515_v38 = vmul.f32 %v2511_v28, %v2511_v28  ;;  %v2516_v34 = vmul.f32 %v2512_v23, %v2512_v23  ;;  %v2517_v32 = vmul.f32 %v2513_v36, %v2513_v36  ;;  %v2599_v22 = vpop.permute.xlu1 %2598 }
 0x871   :  { %v2518_v35 = vsel %vm125_vm0, %v2514_v20, 0.0  ;;  %v2519_v37 = vsel %vm125_vm0, %v2515_v38, 0.0  ;;  %v2521_v42 = vsel %vm125_vm0, %v2516_v34, 0.0  ;;  %v2523_v45 = vsel %vm125_vm0, %v2517_v32, 0.0 }
 0x872   :  { %v2520_v40 = vadd.f32 %v2519_v37, %v2518_v35 }
 0x874   :  { %v2522_v44 = vadd.f32 %v2521_v42, %v2520_v40 }
 0x876   :  { %v2524_v7 = vadd.f32 %v2523_v45, %v2522_v44 }
 0x878   :  { %v2525_v39 = vrot.slane %v2524_v7, 4 }
 0x87a   :  { %v2526_v31 = vadd.f32 %v2525_v39, %v2524_v7 }
 0x87c   :  { %v2527_v47 = vrot.slane %v2526_v31, 2 }
 0x87e   :  { %v2528_v48 = vadd.f32 %v2527_v47, %v2526_v31 }
 0x880   :  { %v2529_v49 = vrot.slane %v2528_v48, 1 }
 0x882   :  { %v2530_v30 = vadd.f32 %v2529_v49, %v2528_v48 }
 0x884   :  { %v2531_v51 = vmul.f32 0.03125, %v2530_v30 }
 0x886   :  { %v2532_v52 = vadd.f32 1e-05, %v2531_v51 }
 0x888   :  { %3351 = vrsqrt.f32 %v2532_v52 }
 0x895   :  { %v3352_v56 = vpop.eup %3351 }
 0x896   :  { %v2536_v57 = vmul.f32 %v3352_v56, %v2512_v23  ;;  %v2537_v58 = vmul.f32 %v3352_v56, %v2513_v36  ;;  %v2535_v59 = vmul.f32 %v3352_v56, %v2511_v28  ;;  %v2534_v62 = vmul.f32 %v3352_v56, %v2510_v27  ;;  %v2594_v23 = vpop.permute.xlu1 %2593 }
 0x898   :  { %v2561_v60 = vmul.f32 %v2556_v46, %v2537_v58  ;;  %v2560_v61 = vmul.f32 %v2551_v50, %v2536_v57  ;;  %v2559_v63 = vmul.f32 %v2546_v54, %v2535_v59  ;;  %v2558_v1 = vmul.f32 %v2541_v29, %v2534_v62 }
 0x89a   :  { %v3930_v33 = vadd.f32 %v2580_v53, %v2561_v60  ;;  %v3933_v0 = vadd.f32 %v2575_v55, %v2560_v61  ;;  %v3937_v3 = vadd.f32 %v2570_v2, %v2559_v63  ;;  %v3941_v5 = vadd.f32 %v2565_v4, %v2558_v1  ;;  %v2589_v39 = vpop.permute.xlu1 %2588 }
 0x89c   :  { %3246 = vmatprep.subr.mxu1 %v3930_v33 }
 0x89d   :  { %3247 = vmatpush3.msra.mxu1 %v3930_v33 }
 0x89e   :  { %3248 = vmatprep.subr.mxu1 %v3933_v0 }
 0x89f   :  { %3249 = vmatpush3.msra.mxu1 %v3933_v0 }
 0x8a0   :  { %3250 = vmatprep.subr.mxu1 %v3937_v3 }
 0x8a1   :  { %3251 = vmatpush3.msra.mxu1 %v3937_v3 }
 0x8a2   :  { %3252 = vmatprep.subr.mxu1 %v3941_v5 }
 0x8a3   :  { %3253 = vmatpush3.msra.mxu1 %v3941_v5 }
 0x8a4   :  { %3255 = vmatmul.mubr.msk.f32.vlgmr.msra.gmra.mxu1 %vm125_vm0, %v42_v6 }
 0x8a5   :  { %3257 = vmatprep.mubr.msk.f32.mxu1 %vm125_vm0, %v43_v8 }
 0x8a8   :  { %3258 = vmatmul.mubr.msk.f32.gmra.mxu1 %vm125_vm0, %v44_v9 }
 0x8a9   :  { %3260 = vmatprep.mubr.msk.f32.mxu1 %vm125_vm0, %v45_v10 }
 0x8ac   :  { %3261 = vmatmul.mubr.msk.f32.gmra.mxu1 %vm125_vm0, %v46_v11 }
 0x8ad   :  { %3263 = vmatprep.mubr.msk.f32.mxu1 %vm125_vm0, %v47_v12 }
 0x8b0   :  { %3264 = vmatmul.mubr.msk.f32.gmra.mxu1 %vm125_vm0, %v48_v14 }
 0x964   :  { %v3256_v19 = vpop.f32.mrf.mxu1 }
 0x965   :  { %v2722_v44 = vadd.f32 %v3256_v19, %v2594_v23  ;;  %v51_v19 = vld [vmem:[%s4004_s3 + $0x10] sm:$0xff] }
 0x966   :  { %v2716_v41 = vpop.f32.mrf.mxu1 }
 0x967   :  { %v2717_v31 = vadd.f32 %v2716_v41, %v2589_v39  ;;  %v2764_v47 = vmul.f32 0.70710677, %v2722_v44  ;;  %v2756_v14 = vmul.f32 0.5, %v2722_v44  ;;  %v52_v41 = vld [vmem:[%s4004_s3 + $0x18] sm:$0xff] }
 0x968   :  { %v3259_v21 = vpop.f32.mrf.mxu1 }
 0x969   :  { %v2732_v38 = vadd.f32 %v3259_v21, %v2604_v18  ;;  %v2763_v48 = vmul.f32 0.70710677, %v2717_v31  ;;  %v50_v18 = vld [vmem:[%s4004_s3 + $0x8] sm:$0xff]  ;;  %v2798_v21 = vpop.permute.xlu1 %2797  ;;  %s3369_s3 = scalar_lea.vmem %s2926_s11, 512 }
 0x96a   :  { %v2726_v24 = vpop.f32.mrf.mxu1  ;;  %p3370_p0 = scmp.ne.s32.totalorder %s2926_s11, %s3369_s3  ;;  %p3375_p2 = scmp.lt.s32.totalorder %s3369_s3, %s3369_s3 }
 0x96b   :  { %v2727_v37 = vadd.f32 %v2726_v24, %v2599_v22  ;;  %v2766_v45 = vmul.f32 0.70710677, %v2732_v38  ;;  %v2758_v4 = vmul.f32 0.5, %v2732_v38 }
 0x96c   :  { %v3262_v25 = vpop.f32.mrf.mxu1  ;;  %p3376_p3 = por %p3375_p2, %p3374_p1 }
 0x96d   :  { %v2742_v26 = vadd.f32 %v3262_v25, %v2614_v17  ;;  %v2765_v46 = vmul.f32 0.70710677, %v2727_v37  ;;  %v2757_v10 = vmul.f32 0.5, %v2727_v37  ;;  %v2803_v22 = vpop.permute.xlu1 %2802 }
 0x96e   :  { %v2736_v27 = vpop.f32.mrf.mxu1  ;;  %p3377_p4 = pnand %p3376_p3, %p3370_p0 }
 0x96f   :  { %v2737_v28 = vadd.f32 %v2736_v27, %v2609_v43  ;;  %v2768_v36 = vmul.f32 0.70710677, %v2742_v26  ;;  %v2760_v59 = vmul.f32 0.5, %v2742_v26 }
 0x970   :  { %v3265_v20 = vpop.f32.mrf.mxu1 }
 0x971   :  { %v2752_v34 = vadd.f32 %v3265_v20, %v2624_v13  ;;  %v2767_v32 = vmul.f32 0.70710677, %v2737_v28  ;;  %3353 = verf.f32 %v2768_v36  ;;  %v2759_v29 = vmul.f32 0.5, %v2737_v28  ;;  %v2813_v23 = vpop.permute.xlu1 %2812 }
 0x972   :  { %v2746_v35 = vpop.f32.mrf.mxu1 }
 0x973   :  { %v2770_v40 = vmul.f32 0.70710677, %v2752_v34  ;;  %v2747_v42 = vadd.f32 %v2746_v35, %v2619_v16  ;;  %v2762_v51 = vmul.f32 0.5, %v2752_v34  ;;  %v2755_v16 = vmul.f32 0.5, %v2717_v31  ;;  %v2808_v34 = vpop.permute.xlu0 %2807 }
 0x975   :  { %3355 = verf.f32 %v2770_v40  ;;  %v2769_v7 = vmul.f32 0.70710677, %v2747_v42  ;;  %v2761_v54 = vmul.f32 0.5, %v2747_v42 }
 0x976   :  { %3357 = verf.f32 %v2767_v32 }
 0x977   :  { %3359 = verf.f32 %v2769_v7 }
 0x978   :  { %3361 = verf.f32 %v2766_v45 }
 0x979   :  { %3363 = verf.f32 %v2765_v46 }
 0x97a   :  { %3365 = verf.f32 %v2764_v47 }
 0x97b   :  { %3367 = verf.f32 %v2763_v48 }
 0x97e   :  { %v3354_v49 = vpop.eup %3353 }
 0x97f   :  { %v2784_v57 = vadd.f32 1.0, %v3354_v49 }
 0x981   :  { %v2792_v63 = vmul.f32 %v2784_v57, %v2760_v59 }
 0x982   :  { %v3356_v50 = vpop.eup %3355 }
 0x983   :  { %v3358_v30 = vpop.eup %3357  ;;  %v2786_v52 = vadd.f32 1.0, %v3356_v50 }
 0x984   :  { %v3360_v53 = vpop.eup %3359  ;;  %v2783_v61 = vadd.f32 1.0, %v3358_v30 }
 0x985   :  { %v2794_v55 = vmul.f32 %v2786_v52, %v2762_v51  ;;  %v2785_v56 = vadd.f32 1.0, %v3360_v53  ;;  %v3362_v58 = vpop.eup %3361 }
 0x986   :  { %v3364_v62 = vpop.eup %3363  ;;  %v2782_v1 = vadd.f32 1.0, %v3362_v58  ;;  %v2791_v6 = vmul.f32 %v2783_v61, %v2759_v29 }
 0x987   :  { %3266 = vmatprep.subr.mxu0 %v2794_v55  ;;  %v2793_v60 = vmul.f32 %v2785_v56, %v2761_v54  ;;  %v3366_v2 = vpop.eup %3365  ;;  %v2781_v8 = vadd.f32 1.0, %v3364_v62 }
 0x988   :  { %3267 = vmatpush3.msra.mxu0 %v2794_v55  ;;  %v3368_v9 = vpop.eup %3367  ;;  %v2790_v11 = vmul.f32 %v2782_v1, %v2758_v4  ;;  %v2780_v12 = vadd.f32 1.0, %v3366_v2 }
 0x989   :  { %3268 = vmatprep.subr.mxu0 %v2793_v60  ;;  %v2789_v15 = vmul.f32 %v2781_v8, %v2757_v10  ;;  %v2779_v13 = vadd.f32 1.0, %v3368_v9 }
 0x98a   :  { %3269 = vmatpush3.msra.mxu0 %v2793_v60  ;;  %v2788_v17 = vmul.f32 %v2780_v12, %v2756_v14 }
 0x98b   :  { %3270 = vmatprep.subr.mxu0 %v2792_v63  ;;  %v2787_v43 = vmul.f32 %v2779_v13, %v2755_v16 }
 0x98c   :  { %3271 = vmatpush3.msra.mxu0 %v2792_v63 }
 0x98d   :  { %3272 = vmatprep.subr.mxu0 %v2791_v6 }
 0x98e   :  { %3273 = vmatpush3.msra.mxu0 %v2791_v6 }
 0x98f   :  { %3274 = vmatprep.subr.mxu0 %v2790_v11 }
 0x990   :  { %3275 = vmatpush3.msra.mxu0 %v2790_v11 }
 0x991   :  { %3276 = vmatprep.subr.mxu0 %v2789_v15 }
 0x992   :  { %3277 = vmatpush3.msra.mxu0 %v2789_v15 }
 0x993   :  { %3278 = vmatprep.subr.mxu0 %v2788_v17 }
 0x994   :  { %3279 = vmatpush3.msra.mxu0 %v2788_v17 }
 0x995   :  { %3280 = vmatprep.subr.mxu0 %v2787_v43 }
 0x996   :  { %3281 = vmatpush3.msra.mxu0 %v2787_v43 }
 0x997   :  { %3283 = vmatmul.mubr.msk.f32.vlgmr.msra.gmra.mxu0 %vm247_vm1, %v50_v18 }
 0x998   :  { %3285 = vmatprep.mubr.msk.f32.mxu0 %vm247_vm1, %v51_v19 }
 0x99b   :  { %3286 = vmatmul.mubr.msk.f32.gmra.mxu0 %vm247_vm1, %v52_v41 }
 0xa57   :  { %v3284_v24 = vpop.f32.mrf.mxu0 }
 0xa58   :  { %v2899_v25 = vadd.f32 %v3284_v24, %v2803_v22 }
 0xa59   :  { %v2893_v26 = vpop.f32.mrf.mxu0 }
 0xa5a   :  { %v2913_v27 = vadd.f32 %v2899_v25, %v3937_v3  ;;  %v2894_v28 = vadd.f32 %v2893_v26, %v2798_v21 }
 0xa5b   :  { %v3287_v36 = vpop.f32.mrf.mxu0 }
 0xa5c   :  { %2917 = vst.msk [vmem:[#allocation3 + $0x8] sm:$0xff] %vm125_vm0, %v2913_v27  ;;  %v2912_v20 = vadd.f32 %v2894_v28, %v3941_v5  ;;  %v2909_v38 = vadd.f32 %v3287_v36, %v2813_v23 }
 0xa5d   :  { %v2903_v32 = vpop.f32.mrf.mxu0 }
 0xa5e   :  { %2916 = vst.msk [vmem:[#allocation3] sm:$0xff] %vm125_vm0, %v2912_v20  ;;  %v2915_v35 = vadd.f32 %v2909_v38, %v3930_v33  ;;  %v2904_v37 = vadd.f32 %v2903_v32, %v2808_v34 }
 0xa60   :  { %2919 = vst.msk [vmem:[#allocation3 + $0x18] sm:$0xff] %vm125_vm0, %v2915_v35  ;;  %v2914_v3 = vadd.f32 %v2904_v37, %v3933_v0 }
 0xa62   :  { %2918 = vst.msk [vmem:[#allocation3 + $0x10] sm:$0xff] %vm125_vm0, %v2914_v3 }
 0xa63   :  { %3380 = shalt.err (!%p3377_p4)
}
 0xa64   :  { %s3400_s12 = smov 128   ;;  %s3401_s13 = smov 8  }
 0xa65   :  { %2931 = dma.vmem_to_hbm [thread:$0]  %s2926_s11, 512, %s4006_s5, [#allocation4], %s3400_s12, %s3400_s12, %s3401_s13  }
 0xa66   :  { %3389 = dma.done.wait [#allocation4], 512  }
 0xa67   :  { %3390 = vsyncadd [#allocation4], 4294966784 }
 0xa68   :  { %2935 = vsyncpa [#allocation4], 1 }

</bundles_post_ra>
